<compile_context>
chip_gen: v7x
topology: tpu7x:2x2x1
jax: 0.10.0
libtpu: 0.0.40
codegen_flags: <defaults>
</compile_context>

<pallas_src>
import numpy as np
import jax
import jax.numpy as jnp
from jax import lax
from jax.experimental import pallas as pl
from jax.experimental.pallas import tpu as pltpu

BN_EPS = 1e-5
NUM_CLASSES = 10
C_OUT = 64
HW = 100           # 10x10 conv output positions
POOLED = 25        # 5x5 after 2x2 avg pool
K_IM2COL = 27      # 3 channels * 3 * 3 kernel
WCP_COLS = 32      # 27 conv-weight cols + gamma + beta + zero pad
PM_COLS = 128      # pool matrix stored lane-dense (cols >= 25 are zero)
WL_COLS = 256      # 250 real linear-weight cols (j*25+p) + zero pad


def example_model_kernel(patT_ref,  # [27, 100]  im2col patches (K x positions)
                         wcp_ref,   # [64, 32]   cols 0..26 conv W, 27 gamma, 28 beta
                         pm_ref,    # [100, 128] avg-pool matrix (cols >= 25 zero)
                         wl_ref,    # [64, 256]  linear W, col = class*25 + p
                         bias_ref,  # [1, 10]    linear bias (lane vector)
                         out_ref):  # [1, 10]    softmax output
    # ---- Conv2d as one MXU matmul: [64,27] @ [27,100] -> [64,100] ----
    y = jnp.dot(wcp_ref[:, :K_IM2COL], patT_ref[...],
                preferred_element_type=jnp.float32)

    # ---- BatchNorm2d (training-mode batch stats), two-pass / shifted form ----
    inv_n = 1.0 / HW
    mean = jnp.sum(y, axis=1, keepdims=True) * inv_n          # [64, 1]
    d = y - mean
    var = jnp.sum(d * d, axis=1, keepdims=True) * inv_n       # [64, 1] (biased)
    gamma = wcp_ref[:, K_IM2COL:K_IM2COL + 1]                 # [64, 1]
    beta = wcp_ref[:, K_IM2COL + 1:K_IM2COL + 2]              # [64, 1]
    scale = gamma * lax.rsqrt(var + BN_EPS)
    # ---- ReLU fused with the BN affine (VPU) ----
    act = jnp.maximum(d * scale + beta, 0.0)                  # [64, 100]

    # ---- AvgPool2d(2,2) as MXU matmul: [64,100] @ [100,128] -> take cols :25 ----
    pooled = jnp.dot(act, pm_ref[...],
                     preferred_element_type=jnp.float32)[:, :POOLED]  # [64, 25]

    # ---- flatten (NCHW order) + Linear(1600, 10) ----
    # Per class j: elementwise mul with the lane-dense weight slice and a LANE
    # reduce only -> [64,1], selected into column j of a [64,10] accumulator.
    # A single sublane collapse at the end produces the [1,10] logits.
    col = lax.broadcasted_iota(jnp.int32, (C_OUT, NUM_CLASSES), 1)
    acc = jnp.zeros((C_OUT, NUM_CLASSES), jnp.float32)
    for j in range(NUM_CLASSES):
        wj = wl_ref[:, j * POOLED:(j + 1) * POOLED]            # [64, 25] static slice
        rj = jnp.sum(wj * pooled, axis=1, keepdims=True)       # [64, 1] lane reduce
        acc = jnp.where(col == j, rj, acc)
    logits = jnp.sum(acc, axis=0, keepdims=True) + bias_ref[...]   # [1, 10]

    # ---- Softmax over the 10 logits (lane axis) ----
    m = jnp.max(logits, axis=1, keepdims=True)
    e = jnp.exp(logits - m)
    out_ref[...] = e / jnp.sum(e, axis=1, keepdims=True)


def _make_pool_matrix():
    """[100,128] matrix implementing 2x2/2 average pooling on a 10x10 grid.
    Column (ph*5 + pw) for the first 25 columns; columns >= 25 stay zero so the
    operand is lane-dense/aligned and the extra matmul columns are ignored."""
    pm = np.zeros((HW, PM_COLS), dtype=np.float32)
    for oh in range(10):
        for ow in range(10):
            pm[oh * 10 + ow, (oh // 2) * 5 + (ow // 2)] = 0.25
    return jnp.asarray(pm)


def prepare_params(w_conv, gamma, beta, w_lin, b_lin):
    """One-time parameter packing (kept OFF the per-call hot path)."""
    # Conv weight + BN gamma/beta packed in one [64, 32] operand.
    wcp = np.zeros((C_OUT, WCP_COLS), dtype=np.float32)
    wcp[:, :K_IM2COL] = np.asarray(w_conv, np.float32).reshape(C_OUT, K_IM2COL)
    wcp[:, K_IM2COL] = np.asarray(gamma, np.float32)
    wcp[:, K_IM2COL + 1] = np.asarray(beta, np.float32)
    wcp = jnp.asarray(wcp)

    pm = _make_pool_matrix()                                     # [100, 128]

    # Linear weight, lane-dense: wl2[c, j*25 + p] = w_lin[j, c*25 + p].
    w = np.asarray(w_lin, np.float32).reshape(NUM_CLASSES, C_OUT, POOLED)
    wl2 = np.zeros((C_OUT, WL_COLS), dtype=np.float32)
    wl2[:, :NUM_CLASSES * POOLED] = np.transpose(w, (1, 0, 2)).reshape(
        C_OUT, NUM_CLASSES * POOLED)
    wl2 = jnp.asarray(wl2)

    bias_row = jnp.asarray(b_lin, jnp.float32).reshape(1, NUM_CLASSES)
    return wcp, pm, wl2, bias_row


@jax.jit
def example_model_forward(x, wcp, pm, wl2, bias_row):
    # im2col for the non-overlapping stride-3 conv: one reshape + one transpose.
    # Row k = c*9 + kh*3 + kw (matches OIHW weight flatten); col p = oh*10 + ow.
    # allow_input_fusion lets XLA fuse this producer into the pallas_call input,
    # avoiding a separate op + HBM round trip of the [27,100] intermediate.
    xr = x.astype(jnp.float32).reshape(3, 10, 3, 10, 3)      # [c, oh, kh, ow, kw]
    patT = xr.transpose(0, 2, 4, 1, 3).reshape(K_IM2COL, HW)  # [27, 100]

    vmem_spec = pl.BlockSpec(memory_space=pltpu.MemorySpace.VMEM)
    out = pl.pallas_call(
        example_model_kernel,
        out_shape=jax.ShapeDtypeStruct((1, NUM_CLASSES), jnp.float32),
        in_specs=[vmem_spec] * 5,
        out_specs=vmem_spec,
        cost_estimate=pl.CostEstimate(
            flops=2_000_000, transcendentals=80, bytes_accessed=150_000),
        compiler_params=pltpu.CompilerParams(
            allow_input_fusion=[True, False, False, False, False]),
        # No grid: every operand is tiny and mapped whole into VMEM (< 200 KiB).
    )(patT, wcp, pm, wl2, bias_row)
    return out.reshape(NUM_CLASSES)   # free bitcast, matches PyTorch output shape


def reference_forward(x, w_conv, gamma, beta, w_lin, b_lin):
    """Pure-JAX reference replicating the PyTorch forward (train-mode BN)."""
    y = lax.conv_general_dilated(
        x, w_conv, window_strides=(3, 3), padding="VALID",
        dimension_numbers=("NCHW", "OIHW", "NCHW"))            # [1, 64, 10, 10]
    mean = y.mean(axis=(0, 2, 3), keepdims=True)
    var = ((y - mean) ** 2).mean(axis=(0, 2, 3), keepdims=True)
    y = (y - mean) / jnp.sqrt(var + BN_EPS)
    y = y * gamma.reshape(1, 64, 1, 1) + beta.reshape(1, 64, 1, 1)
    y = jnp.maximum(y, 0.0)
    y = y.reshape(1, 64, 5, 2, 5, 2).mean(axis=(3, 5))          # [1, 64, 5, 5]
    flat = y.reshape(-1)                                        # [1600]
    logits = w_lin @ flat + b_lin                               # [10]
    return jax.nn.softmax(logits, axis=0)


if __name__ == "__main__":
    key = jax.random.PRNGKey(0)
    k_x, k_wc, k_g, k_b, k_wl, k_bl = jax.random.split(key, 6)

    # Input: NCHW [1, 3, 30, 30] — the only size consistent with Linear(1600, 10)
    # after conv(k=3, s=3) -> 10x10 and AvgPool(2,2) -> 5x5 (64*5*5 = 1600).
    x = jax.random.normal(k_x, (1, 3, 30, 30), dtype=jnp.float32)

    # Deterministic synthetic parameters
    w_conv = jax.random.normal(k_wc, (64, 3, 3, 3), dtype=jnp.float32) * 0.1
    gamma = 1.0 + 0.1 * jax.random.normal(k_g, (64,), dtype=jnp.float32)
    beta = 0.1 * jax.random.normal(k_b, (64,), dtype=jnp.float32)
    w_lin = jax.random.normal(k_wl, (10, 1600), dtype=jnp.float32) * 0.05
    b_lin = 0.1 * jax.random.normal(k_bl, (10,), dtype=jnp.float32)

    # One-time packing (outside the jitted per-call path)
    wcp, pm, wl2, bias_row = prepare_params(w_conv, gamma, beta, w_lin, b_lin)

    out = example_model_forward(x, wcp, pm, wl2, bias_row)
    out = jax.block_until_ready(out)

    ref = reference_forward(x, w_conv, gamma, beta, w_lin, b_lin)
    np.testing.assert_allclose(np.asarray(out), np.asarray(ref), rtol=1e-4, atol=1e-5)

    print("KERNEL_OK")
</pallas_src>

<mosaic_0001>
module attributes {stable_mosaic.version = 11 : i64} {
  func.func @example_model_kernel(%arg0: memref<27x100xf32, #tpu.memory_space<vmem>>, %arg1: memref<64x32xf32, #tpu.memory_space<vmem>>, %arg2: memref<100x128xf32, #tpu.memory_space<vmem>>, %arg3: memref<64x256xf32, #tpu.memory_space<vmem>>, %arg4: memref<1x10xf32, #tpu.memory_space<vmem>>, %arg5: memref<1x10xf32, #tpu.memory_space<vmem>>) attributes {dimension_semantics = [], scalar_prefetch = 0 : i64, scratch_operands = 0 : i64, tpu.core_type = #tpu.core_type<tc>} {
    %c0 = arith.constant 0 : index
    %c0_0 = arith.constant 0 : index
    %0 = vector.load %arg1[%c0, %c0_0] : memref<64x32xf32, #tpu.memory_space<vmem>>, vector<64x27xf32>
    %c0_1 = arith.constant 0 : index
    %c0_2 = arith.constant 0 : index
    %1 = vector.load %arg0[%c0_1, %c0_2] : memref<27x100xf32, #tpu.memory_space<vmem>>, vector<27x100xf32>
    %cst = arith.constant dense<0.000000e+00> : vector<64x100xf32>
    %2 = tpu.matmul %0, %1, %cst {dimension_numbers = #tpu.dot_dimension_numbers<[1], [0], [0], [1], [0, 0, 1, 1], [], []>} : vector<64x27xf32>, vector<27x100xf32>, vector<64x100xf32> -> vector<64x100xf32>
    %cst_3 = arith.constant dense<0.000000e+00> : vector<64xf32>
    %3 = vector.multi_reduction <add>, %2, %cst_3 [1] : vector<64x100xf32> to vector<64xf32>
    %4 = vector.shape_cast %3 : vector<64xf32> to vector<64x1xf32>
    %cst_4 = arith.constant 0.00999999977 : f32
    %5 = vector.broadcast %cst_4 : f32 to vector<64x1xf32>
    %6 = arith.mulf %4, %5 : vector<64x1xf32>
    %7 = vector.broadcast %6 : vector<64x1xf32> to vector<64x100xf32>
    %8 = arith.subf %2, %7 : vector<64x100xf32>
    %9 = arith.mulf %8, %8 : vector<64x100xf32>
    %cst_5 = arith.constant dense<0.000000e+00> : vector<64xf32>
    %10 = vector.multi_reduction <add>, %9, %cst_5 [1] : vector<64x100xf32> to vector<64xf32>
    %11 = vector.shape_cast %10 : vector<64xf32> to vector<64x1xf32>
    %cst_6 = arith.constant 0.00999999977 : f32
    %12 = vector.broadcast %cst_6 : f32 to vector<64x1xf32>
    %13 = arith.mulf %11, %12 : vector<64x1xf32>
    %c0_7 = arith.constant 0 : index
    %c27 = arith.constant 27 : index
    %14 = vector.load %arg1[%c0_7, %c27] : memref<64x32xf32, #tpu.memory_space<vmem>>, vector<64x1xf32>
    %c0_8 = arith.constant 0 : index
    %c28 = arith.constant 28 : index
    %15 = vector.load %arg1[%c0_8, %c28] : memref<64x32xf32, #tpu.memory_space<vmem>>, vector<64x1xf32>
    %cst_9 = arith.constant 9.99999974E-6 : f32
    %16 = vector.broadcast %cst_9 : f32 to vector<64x1xf32>
    %17 = arith.addf %13, %16 : vector<64x1xf32>
    %18 = math.rsqrt %17 : vector<64x1xf32>
    %19 = arith.mulf %14, %18 : vector<64x1xf32>
    %20 = vector.broadcast %19 : vector<64x1xf32> to vector<64x100xf32>
    %21 = arith.mulf %8, %20 : vector<64x100xf32>
    %22 = vector.broadcast %15 : vector<64x1xf32> to vector<64x100xf32>
    %23 = arith.addf %21, %22 : vector<64x100xf32>
    %cst_10 = arith.constant 0.000000e+00 : f32
    %24 = vector.broadcast %cst_10 : f32 to vector<64x100xf32>
    %25 = arith.maximumf %23, %24 : vector<64x100xf32>
    %c0_11 = arith.constant 0 : index
    %c0_12 = arith.constant 0 : index
    %26 = vector.load %arg2[%c0_11, %c0_12] : memref<100x128xf32, #tpu.memory_space<vmem>>, vector<100x128xf32>
    %cst_13 = arith.constant dense<0.000000e+00> : vector<64x128xf32>
    %27 = tpu.matmul %25, %26, %cst_13 {dimension_numbers = #tpu.dot_dimension_numbers<[1], [0], [0], [1], [0, 0, 1, 1], [], []>} : vector<64x100xf32>, vector<100x128xf32>, vector<64x128xf32> -> vector<64x128xf32>
    %28 = vector.extract_strided_slice %27 {offsets = [0, 0], sizes = [64, 25], strides = [1, 1]} : vector<64x128xf32> to vector<64x25xf32>
    %29 = tpu.iota {dimensions = array<i32: 1>} : vector<64x10xi32>
    %cst_14 = arith.constant 0.000000e+00 : f32
    %30 = vector.broadcast %cst_14 : f32 to vector<64x10xf32>
    %c0_15 = arith.constant 0 : index
    %c0_16 = arith.constant 0 : index
    %31 = vector.load %arg3[%c0_15, %c0_16] : memref<64x256xf32, #tpu.memory_space<vmem>>, vector<64x25xf32>
    %32 = arith.mulf %31, %28 : vector<64x25xf32>
    %cst_17 = arith.constant dense<0.000000e+00> : vector<64xf32>
    %33 = vector.multi_reduction <add>, %32, %cst_17 [1] : vector<64x25xf32> to vector<64xf32>
    %34 = vector.shape_cast %33 : vector<64xf32> to vector<64x1xf32>
    %c0_i32 = arith.constant 0 : i32
    %35 = vector.broadcast %c0_i32 : i32 to vector<64x10xi32>
    %36 = arith.cmpi eq, %29, %35 : vector<64x10xi32>
    %37 = vector.shape_cast %34 : vector<64x1xf32> to vector<64x1xf32>
    %38 = vector.broadcast %37 : vector<64x1xf32> to vector<64x10xf32>
    %39 = arith.select %36, %38, %30 : vector<64x10xi1>, vector<64x10xf32>
    %c0_18 = arith.constant 0 : index
    %c25 = arith.constant 25 : index
    %40 = vector.load %arg3[%c0_18, %c25] : memref<64x256xf32, #tpu.memory_space<vmem>>, vector<64x25xf32>
    %41 = arith.mulf %40, %28 : vector<64x25xf32>
    %cst_19 = arith.constant dense<0.000000e+00> : vector<64xf32>
    %42 = vector.multi_reduction <add>, %41, %cst_19 [1] : vector<64x25xf32> to vector<64xf32>
    %43 = vector.shape_cast %42 : vector<64xf32> to vector<64x1xf32>
    %c1_i32 = arith.constant 1 : i32
    %44 = vector.broadcast %c1_i32 : i32 to vector<64x10xi32>
    %45 = arith.cmpi eq, %29, %44 : vector<64x10xi32>
    %46 = vector.shape_cast %43 : vector<64x1xf32> to vector<64x1xf32>
    %47 = vector.broadcast %46 : vector<64x1xf32> to vector<64x10xf32>
    %48 = arith.select %45, %47, %39 : vector<64x10xi1>, vector<64x10xf32>
    %c0_20 = arith.constant 0 : index
    %c50 = arith.constant 50 : index
    %49 = vector.load %arg3[%c0_20, %c50] : memref<64x256xf32, #tpu.memory_space<vmem>>, vector<64x25xf32>
    %50 = arith.mulf %49, %28 : vector<64x25xf32>
    %cst_21 = arith.constant dense<0.000000e+00> : vector<64xf32>
    %51 = vector.multi_reduction <add>, %50, %cst_21 [1] : vector<64x25xf32> to vector<64xf32>
    %52 = vector.shape_cast %51 : vector<64xf32> to vector<64x1xf32>
    %c2_i32 = arith.constant 2 : i32
    %53 = vector.broadcast %c2_i32 : i32 to vector<64x10xi32>
    %54 = arith.cmpi eq, %29, %53 : vector<64x10xi32>
    %55 = vector.shape_cast %52 : vector<64x1xf32> to vector<64x1xf32>
    %56 = vector.broadcast %55 : vector<64x1xf32> to vector<64x10xf32>
    %57 = arith.select %54, %56, %48 : vector<64x10xi1>, vector<64x10xf32>
    %c0_22 = arith.constant 0 : index
    %c75 = arith.constant 75 : index
    %58 = vector.load %arg3[%c0_22, %c75] : memref<64x256xf32, #tpu.memory_space<vmem>>, vector<64x25xf32>
    %59 = arith.mulf %58, %28 : vector<64x25xf32>
    %cst_23 = arith.constant dense<0.000000e+00> : vector<64xf32>
    %60 = vector.multi_reduction <add>, %59, %cst_23 [1] : vector<64x25xf32> to vector<64xf32>
    %61 = vector.shape_cast %60 : vector<64xf32> to vector<64x1xf32>
    %c3_i32 = arith.constant 3 : i32
    %62 = vector.broadcast %c3_i32 : i32 to vector<64x10xi32>
    %63 = arith.cmpi eq, %29, %62 : vector<64x10xi32>
    %64 = vector.shape_cast %61 : vector<64x1xf32> to vector<64x1xf32>
    %65 = vector.broadcast %64 : vector<64x1xf32> to vector<64x10xf32>
    %66 = arith.select %63, %65, %57 : vector<64x10xi1>, vector<64x10xf32>
    %c0_24 = arith.constant 0 : index
    %c100 = arith.constant 100 : index
    %67 = vector.load %arg3[%c0_24, %c100] : memref<64x256xf32, #tpu.memory_space<vmem>>, vector<64x25xf32>
    %68 = arith.mulf %67, %28 : vector<64x25xf32>
    %cst_25 = arith.constant dense<0.000000e+00> : vector<64xf32>
    %69 = vector.multi_reduction <add>, %68, %cst_25 [1] : vector<64x25xf32> to vector<64xf32>
    %70 = vector.shape_cast %69 : vector<64xf32> to vector<64x1xf32>
    %c4_i32 = arith.constant 4 : i32
    %71 = vector.broadcast %c4_i32 : i32 to vector<64x10xi32>
    %72 = arith.cmpi eq, %29, %71 : vector<64x10xi32>
    %73 = vector.shape_cast %70 : vector<64x1xf32> to vector<64x1xf32>
    %74 = vector.broadcast %73 : vector<64x1xf32> to vector<64x10xf32>
    %75 = arith.select %72, %74, %66 : vector<64x10xi1>, vector<64x10xf32>
    %c0_26 = arith.constant 0 : index
    %c125 = arith.constant 125 : index
    %76 = vector.load %arg3[%c0_26, %c125] : memref<64x256xf32, #tpu.memory_space<vmem>>, vector<64x25xf32>
    %77 = arith.mulf %76, %28 : vector<64x25xf32>
    %cst_27 = arith.constant dense<0.000000e+00> : vector<64xf32>
    %78 = vector.multi_reduction <add>, %77, %cst_27 [1] : vector<64x25xf32> to vector<64xf32>
    %79 = vector.shape_cast %78 : vector<64xf32> to vector<64x1xf32>
    %c5_i32 = arith.constant 5 : i32
    %80 = vector.broadcast %c5_i32 : i32 to vector<64x10xi32>
    %81 = arith.cmpi eq, %29, %80 : vector<64x10xi32>
    %82 = vector.shape_cast %79 : vector<64x1xf32> to vector<64x1xf32>
    %83 = vector.broadcast %82 : vector<64x1xf32> to vector<64x10xf32>
    %84 = arith.select %81, %83, %75 : vector<64x10xi1>, vector<64x10xf32>
    %c0_28 = arith.constant 0 : index
    %c150 = arith.constant 150 : index
    %85 = vector.load %arg3[%c0_28, %c150] : memref<64x256xf32, #tpu.memory_space<vmem>>, vector<64x25xf32>
    %86 = arith.mulf %85, %28 : vector<64x25xf32>
    %cst_29 = arith.constant dense<0.000000e+00> : vector<64xf32>
    %87 = vector.multi_reduction <add>, %86, %cst_29 [1] : vector<64x25xf32> to vector<64xf32>
    %88 = vector.shape_cast %87 : vector<64xf32> to vector<64x1xf32>
    %c6_i32 = arith.constant 6 : i32
    %89 = vector.broadcast %c6_i32 : i32 to vector<64x10xi32>
    %90 = arith.cmpi eq, %29, %89 : vector<64x10xi32>
    %91 = vector.shape_cast %88 : vector<64x1xf32> to vector<64x1xf32>
    %92 = vector.broadcast %91 : vector<64x1xf32> to vector<64x10xf32>
    %93 = arith.select %90, %92, %84 : vector<64x10xi1>, vector<64x10xf32>
    %c0_30 = arith.constant 0 : index
    %c175 = arith.constant 175 : index
    %94 = vector.load %arg3[%c0_30, %c175] : memref<64x256xf32, #tpu.memory_space<vmem>>, vector<64x25xf32>
    %95 = arith.mulf %94, %28 : vector<64x25xf32>
    %cst_31 = arith.constant dense<0.000000e+00> : vector<64xf32>
    %96 = vector.multi_reduction <add>, %95, %cst_31 [1] : vector<64x25xf32> to vector<64xf32>
    %97 = vector.shape_cast %96 : vector<64xf32> to vector<64x1xf32>
    %c7_i32 = arith.constant 7 : i32
    %98 = vector.broadcast %c7_i32 : i32 to vector<64x10xi32>
    %99 = arith.cmpi eq, %29, %98 : vector<64x10xi32>
    %100 = vector.shape_cast %97 : vector<64x1xf32> to vector<64x1xf32>
    %101 = vector.broadcast %100 : vector<64x1xf32> to vector<64x10xf32>
    %102 = arith.select %99, %101, %93 : vector<64x10xi1>, vector<64x10xf32>
    %c0_32 = arith.constant 0 : index
    %c200 = arith.constant 200 : index
    %103 = vector.load %arg3[%c0_32, %c200] : memref<64x256xf32, #tpu.memory_space<vmem>>, vector<64x25xf32>
    %104 = arith.mulf %103, %28 : vector<64x25xf32>
    %cst_33 = arith.constant dense<0.000000e+00> : vector<64xf32>
    %105 = vector.multi_reduction <add>, %104, %cst_33 [1] : vector<64x25xf32> to vector<64xf32>
    %106 = vector.shape_cast %105 : vector<64xf32> to vector<64x1xf32>
    %c8_i32 = arith.constant 8 : i32
    %107 = vector.broadcast %c8_i32 : i32 to vector<64x10xi32>
    %108 = arith.cmpi eq, %29, %107 : vector<64x10xi32>
    %109 = vector.shape_cast %106 : vector<64x1xf32> to vector<64x1xf32>
    %110 = vector.broadcast %109 : vector<64x1xf32> to vector<64x10xf32>
    %111 = arith.select %108, %110, %102 : vector<64x10xi1>, vector<64x10xf32>
    %c0_34 = arith.constant 0 : index
    %c225 = arith.constant 225 : index
    %112 = vector.load %arg3[%c0_34, %c225] : memref<64x256xf32, #tpu.memory_space<vmem>>, vector<64x25xf32>
    %113 = arith.mulf %112, %28 : vector<64x25xf32>
    %cst_35 = arith.constant dense<0.000000e+00> : vector<64xf32>
    %114 = vector.multi_reduction <add>, %113, %cst_35 [1] : vector<64x25xf32> to vector<64xf32>
    %115 = vector.shape_cast %114 : vector<64xf32> to vector<64x1xf32>
    %c9_i32 = arith.constant 9 : i32
    %116 = vector.broadcast %c9_i32 : i32 to vector<64x10xi32>
    %117 = arith.cmpi eq, %29, %116 : vector<64x10xi32>
    %118 = vector.shape_cast %115 : vector<64x1xf32> to vector<64x1xf32>
    %119 = vector.broadcast %118 : vector<64x1xf32> to vector<64x10xf32>
    %120 = arith.select %117, %119, %111 : vector<64x10xi1>, vector<64x10xf32>
    %cst_36 = arith.constant dense<0.000000e+00> : vector<10xf32>
    %121 = vector.multi_reduction <add>, %120, %cst_36 [0] : vector<64x10xf32> to vector<10xf32>
    %122 = vector.shape_cast %121 : vector<10xf32> to vector<1x10xf32>
    %c0_37 = arith.constant 0 : index
    %c0_38 = arith.constant 0 : index
    %123 = vector.load %arg4[%c0_37, %c0_38] : memref<1x10xf32, #tpu.memory_space<vmem>>, vector<1x10xf32>
    %124 = arith.addf %122, %123 : vector<1x10xf32>
    %cst_39 = arith.constant dense<0xFF800000> : vector<1xf32>
    %125 = vector.multi_reduction <maximumf>, %124, %cst_39 [1] : vector<1x10xf32> to vector<1xf32>
    %126 = vector.shape_cast %125 : vector<1xf32> to vector<1x1xf32>
    %127 = vector.broadcast %126 : vector<1x1xf32> to vector<1x10xf32>
    %128 = arith.subf %124, %127 : vector<1x10xf32>
    %129 = math.exp %128 : vector<1x10xf32>
    %cst_40 = arith.constant dense<0.000000e+00> : vector<1xf32>
    %130 = vector.multi_reduction <add>, %129, %cst_40 [1] : vector<1x10xf32> to vector<1xf32>
    %131 = vector.shape_cast %130 : vector<1xf32> to vector<1x1xf32>
    %132 = vector.broadcast %131 : vector<1x1xf32> to vector<1x10xf32>
    %133 = arith.divf %129, %132 : vector<1x10xf32>
    %c0_41 = arith.constant 0 : index
    %c0_42 = arith.constant 0 : index
    %134 = vector.load %arg5[%c0_41, %c0_42] : memref<1x10xf32, #tpu.memory_space<vmem>>, vector<1x10xf32>
    tpu.vector_store %arg5[%c0_41, %c0_42], %133 {strides = array<i32>} : memref<1x10xf32, #tpu.memory_space<vmem>>, vector<1x10xf32>,
    return
  }
}

</mosaic_0001>

<bundles_post_ra>
// kernel: example_model_forward.1
= control target key start
LH: loop header
LB: loop body
LE: loop exit
PB: predicated region body
PF: predicated region fallthrough
CT: control target
= control target key end

     0   :  { %vm58_vm0 = vcmask 1042432   ;;  %vm33_vm1 = vcmask 220160   ;;  %vm1783_vm2 = vmmov 1   ;;  %v1784_v7 = vmov 28   ;;  %s3028_s0 = inlined_call_operand.vmem [shape: f32[27,100], index: 0, kind: input, shape index: {}]   ;;  %s3029_s1 = inlined_call_operand.vmem [shape: f32[64,32], index: 1, kind: input, shape index: {}]   ;;  %s3030_s2 = inlined_call_operand.vmem [shape: f32[100,128], index: 2, kind: input, shape index: {}]   ;;  %s3031_s3 = inlined_call_operand.vmem [shape: f32[64,256], index: 3, kind: input, shape index: {}]   ;;  %s3032_s4 = inlined_call_operand.vmem [shape: f32[1,10], index: 4, kind: input, shape index: {}]   ;;  %s3033_s5 = inlined_call_operand.hbm [shape: f32[1,10], index: 5, kind: output, shape index: {}]  }
   0x1   :  { %v29_v0 = vld [vmem:[%s3028_s0] sm:$0xff]  ;;  %v30_v1 = vld [vmem:[%s3028_s0 + $0x8] sm:$0xff]  ;;  %v31_v2 = vld [vmem:[%s3028_s0 + $0x10] sm:$0xff]  ;;  %1734 = vset.pattern.permute.xlu1 %v1784_v7  ;;  %1735 = vset.pattern.permute.xlu0 %v1784_v7 }
   0x2   :  { %v1664_v3 = vpack.c.bf16 %v30_v1, %v29_v0  ;;  %v32_v4 = vld [vmem:[%s3028_s0 + $0x18] sm:$0x7]  ;;  %v1850_v5 = vld [vmem:[%s3029_s1] sm:$0xff]  ;;  %vm1669_vm3 = vmpackc.low %vm58_vm0, %vm1783_vm2 }
   0x3   :  { %v1668_v6 = vpack.c.bf16 %v32_v4, %v31_v2  ;;  %1614 = vmatprep.mubr.msk.f32.mxu0 %vm33_vm1, %v1850_v5  ;;  %v1859_v8 = vld [vmem:[%s3029_s1 + $0x8] sm:$0xff]  ;;  %321 = vperm.xlu1 %1734, %v1850_v5  }
   0x4   :  { %1665 = vmatprep.subr.bf16.mxu0 %v1664_v3 }
   0x5   :  { %1667 = vmatpush3.bf16.msra.mxu0 %v1664_v3 }
   0x6   :  { %10 = vsyncpa [#allocation3], 0  ;;  %1670 = vmatprep.subr.msk.bf16.mxu0 %vm1669_vm3, %v1668_v6  ;;  %325 = vperm.xlu0 %1735, %v1859_v8   ;;  %v1866_v9 = vld [vmem:[%s3029_s1 + $0x10] sm:$0xff]  ;;  %v1871_v10 = vld [vmem:[%s3029_s1 + $0x20] sm:$0xff]  ;;  %vm167_vm4 = vcmask 818176   ;;  %vm405_vm5 = vcmask 1043456  }
   0x7   :  { %329 = vperm.xlu1 %1734, %v1866_v9   ;;  %v1880_v11 = vld [vmem:[%s3029_s1 + $0x18] sm:$0xff]  ;;  %v1887_v12 = vld [vmem:[%s3029_s1 + $0x30] sm:$0xff]  ;;  %v1896_v13 = vld [vmem:[%s3029_s1 + $0x28] sm:$0xff]  ;;  %s1787_s15 = smov 25   ;;  %s1789_s16 = smov 50   ;;  %vm532_vm6 = vcmask 203776  }
   0x8   :  { %v1906_v14 = vld [vmem:[%s3029_s1 + $0x38] sm:$0xff]  ;;  %s1788_s1 = smov 22   ;;  %s1790_s17 = smov 47   ;;  %vm1066_vm7 = vcmask 23552   ;;  %vm1504_vm2 = vcmask 80896  }
   0x9   :  { %1673 = vmatpush3.bf16.msk.msra.mxu0 %vm1669_vm3, %v1668_v6  ;;  %s1791_s18 = smov 75   ;;  %s1792_s19 = smov 72   ;;  %vm1528_vm3 = vcmask 73728  }
   0xa   :  { %337 = vperm.xlu0 %1735, %v1871_v10   ;;  %s1793_s20 = smov 100   ;;  %s1794_s21 = smov 97  }
   0xb   :  { %333 = vperm.xlu1 %1734, %v1880_v11   ;;  %s1795_s10 = smov 3   ;;  %s1803_s22 = smov 31  }
   0xc   :  { %1615 = vmatmul.mubr.msk.f32.vlgmr.msra.gmra.mrb[0].mxu0 %vm33_vm1, %v1859_v8 }
   0xd   :  { %1617 = vmatprep.mubr.msk.f32.mxu0 %vm33_vm1, %v1866_v9 }
   0xe   :  { %345 = vperm.xlu0 %1735, %v1887_v12  }
   0xf   :  { %341 = vperm.xlu1 %1734, %v1896_v13  }
  0x10   :  { %1618 = vmatmul.mubr.msk.f32.gmra.mrb[2].mxu0 %vm33_vm1, %v1880_v11 }
  0x11   :  { %1620 = vmatprep.mubr.msk.f32.mxu0 %vm33_vm1, %v1871_v10 }
  0x13   :  { %349 = vperm.xlu1 %1734, %v1906_v14  }
  0x14   :  { %1621 = vmatmul.mubr.msk.f32.gmra.mrb[4].mxu0 %vm33_vm1, %v1896_v13 }
  0x15   :  { %1623 = vmatprep.mubr.msk.f32.mxu0 %vm33_vm1, %v1887_v12 }
  0x18   :  { %1624 = vmatmul.mubr.msk.f32.gmra.mrb[6].mxu0 %vm33_vm1, %v1906_v14 }
  0x82   :  { %v1921_v31 = vpop.permute.xlu1 %321 }
  0x85   :  { %v1925_v33 = vpop.permute.xlu0 %325 }
  0x86   :  { %v1923_v32 = vpop.permute.xlu1 %329 }
  0x89   :  { %v1929_v35 = vpop.permute.xlu0 %337 }
  0x8a   :  { %v1927_v34 = vpop.permute.xlu1 %333 }
  0x8d   :  { %v1933_v37 = vpop.permute.xlu0 %345 }
  0x8e   :  { %v1931_v36 = vpop.permute.xlu1 %341 }
  0x92   :  { %v1935_v38 = vpop.permute.xlu1 %349 }
  0xdf   :  { %v1616_v15 = vpop.f32.mrb[0].mxu0 }
  0xe0   :  { %v128_v16 = vpop.f32.mrb[1].mxu0  ;;  %v171_v17 = vsel %vm167_vm4, %v1616_v15, 0.0 }
  0xe1   :  { %172 = vadd.xlane.f32.xlu0 %v171_v17  ;;  %v168_v19 = vsel %vm167_vm4, %v128_v16, 0.0 }
  0xe3   :  { %v1619_v18 = vpop.f32.mrb[2].mxu0 }
  0xe4   :  { %v177_v20 = vsel %vm167_vm4, %v1619_v18, 0.0  ;;  %v138_v21 = vpop.f32.mrb[3].mxu0 }
  0xe5   :  { %169 = vadd.xlane.f32.xlu0 %v168_v19  ;;  %178 = vadd.xlane.f32.xlu1 %v177_v20  ;;  %v174_v22 = vsel %vm167_vm4, %v138_v21, 0.0 }
  0xe7   :  { %v1622_v23 = vpop.f32.mrb[4].mxu0 }
  0xe8   :  { %v148_v24 = vpop.f32.mrb[5].mxu0  ;;  %v183_v26 = vsel %vm167_vm4, %v1622_v23, 0.0 }
  0xe9   :  { %175 = vadd.xlane.f32.xlu1 %v174_v22  ;;  %v180_v25 = vsel %vm167_vm4, %v148_v24, 0.0 }
  0xea   :  { %181 = vadd.xlane.f32.xlu0 %v180_v25  ;;  %v368_v25 = vld [vmem:[%s3030_s2] sm:$0xff] }
  0xeb   :  { %v1625_v27 = vpop.f32.mrb[6].mxu0 }
  0xec   :  { %v158_v28 = vpop.f32.mrb[7].mxu0  ;;  %v189_v30 = vsel %vm167_vm4, %v1625_v27, 0.0 }
  0xed   :  { %184 = vadd.xlane.f32.xlu1 %v183_v26  ;;  %v186_v29 = vsel %vm167_vm4, %v158_v28, 0.0  ;;  %v369_v26 = vld [vmem:[%s3030_s2 + $0x8] sm:$0xff] }
  0xee   :  { %187 = vadd.xlane.f32.xlu0 %v186_v29  ;;  %v371_v29 = vld [vmem:[%s3030_s2 + $0x18] sm:$0xff] }
  0xf1   :  { %190 = vadd.xlane.f32.xlu1 %v189_v30 }
 0x16e   :  { %v173_v39 = vpop.xlane.xlu0 %172 }
 0x16f   :  { %v193_v40 = vmul.f32 0.01, %v173_v39  ;;  %v372_v39 = vld [vmem:[%s3030_s2 + $0x20] sm:$0xff] }
 0x171   :  { %v1937_v41 = vsub.f32 %v1616_v15, %v193_v40  ;;  %v373_v40 = vld [vmem:[%s3030_s2 + $0x28] sm:$0xff] }
 0x172   :  { %v170_v42 = vpop.xlane.xlu0 %169  ;;  %v179_v43 = vpop.xlane.xlu1 %178 }
 0x173   :  { %v192_v44 = vmul.f32 0.01, %v170_v42  ;;  %v195_v45 = vmul.f32 0.01, %v179_v43  ;;  %v209_v46 = vmul.f32 %v1937_v41, %v1937_v41  ;;  %v1682_v42 = vpack.c.bf16 %v373_v40, %v372_v39  ;;  %v374_v43 = vld [vmem:[%s3030_s2 + $0x30] sm:$0xff] }
 0x175   :  { %v1941_v47 = vsub.f32 %v128_v16, %v192_v44  ;;  %v1943_v48 = vsub.f32 %v1619_v18, %v195_v45  ;;  %v219_v49 = vsel %vm167_vm4, %v209_v46, 0.0  ;;  %v375_v44 = vld [vmem:[%s3030_s2 + $0x38] sm:$0xff] }
 0x176   :  { %v176_v50 = vpop.xlane.xlu1 %175  ;;  %220 = vadd.xlane.f32.xlu1 %v219_v49  ;;  %v1686_v45 = vpack.c.bf16 %v375_v44, %v374_v43  ;;  %v380_v43 = vld [vmem:[%s3030_s2 + $0x60] sm:$0xf] }
 0x177   :  { %v194_v51 = vmul.f32 0.01, %v176_v50  ;;  %v182_v52 = vpop.xlane.xlu0 %181  ;;  %v211_v53 = vmul.f32 %v1943_v48, %v1943_v48  ;;  %v208_v54 = vmul.f32 %v1941_v47, %v1941_v47 }
 0x178   :  { %v196_v55 = vmul.f32 0.01, %v182_v52 }
 0x179   :  { %v1950_v56 = vsub.f32 %v138_v21, %v194_v51  ;;  %v225_v57 = vsel %vm167_vm4, %v211_v53, 0.0  ;;  %v216_v58 = vsel %vm167_vm4, %v208_v54, 0.0 }
 0x17a   :  { %v1954_v59 = vsub.f32 %v148_v24, %v196_v55  ;;  %v185_v60 = vpop.xlane.xlu1 %184  ;;  %226 = vadd.xlane.f32.xlu1 %v225_v57  ;;  %217 = vadd.xlane.f32.xlu0 %v216_v58  ;;  %v1785_v24 = vmov 27  }
 0x17b   :  { %v197_v61 = vmul.f32 0.01, %v185_v60  ;;  %v188_v62 = vpop.xlane.xlu0 %187  ;;  %v210_v63 = vmul.f32 %v1950_v56, %v1950_v56  ;;  %1736 = vset.pattern.permute.xlu1 %v1785_v24  ;;  %1737 = vset.pattern.permute.xlu0 %v1785_v24 }
 0x17c   :  { %v198_v0 = vmul.f32 0.01, %v188_v62  ;;  %v212_v3 = vmul.f32 %v1954_v59, %v1954_v59 }
 0x17d   :  { %v1958_v1 = vsub.f32 %v1622_v23, %v197_v61  ;;  %v222_v2 = vsel %vm167_vm4, %v210_v63, 0.0 }
 0x17e   :  { %v1963_v4 = vsub.f32 %v158_v28, %v198_v0  ;;  %v191_v6 = vpop.xlane.xlu1 %190  ;;  %223 = vadd.xlane.f32.xlu0 %v222_v2  ;;  %v228_v19 = vsel %vm167_vm4, %v212_v3, 0.0  ;;  %v1674_v28 = vpack.c.bf16 %v369_v26, %v368_v25 }
 0x17f   :  { %v199_v15 = vmul.f32 0.01, %v191_v6  ;;  %v213_v16 = vmul.f32 %v1958_v1, %v1958_v1 }
 0x180   :  { %v214_v20 = vmul.f32 %v1963_v4, %v1963_v4  ;;  %1675 = vmatprep.subr.bf16.mxu0 %v1674_v28  ;;  %1698 = vmatprep.subr.bf16.mxu1 %v1674_v28 }
 0x181   :  { %v1967_v17 = vsub.f32 %v1625_v27, %v199_v15  ;;  %v231_v18 = vsel %vm167_vm4, %v213_v16, 0.0  ;;  %v370_v27 = vld [vmem:[%s3030_s2 + $0x10] sm:$0xff]  ;;  %1677 = vmatpush3.bf16.msra.mxu0 %v1674_v28  ;;  %1705 = vmatpush3.bf16.msra.mxu1 %v1674_v28 }
 0x182   :  { %232 = vadd.xlane.f32.xlu1 %v231_v18  ;;  %229 = vadd.xlane.f32.xlu0 %v228_v19  ;;  %v234_v23 = vsel %vm167_vm4, %v214_v20, 0.0  ;;  %v1678_v30 = vpack.c.bf16 %v371_v29, %v370_v27  ;;  %v378_v29 = vld [vmem:[%s3030_s2 + $0x50] sm:$0xff] }
 0x183   :  { %v215_v21 = vmul.f32 %v1967_v17, %v1967_v17 }
 0x184   :  { %1679 = vmatprep.subr.bf16.mxu0 %v1678_v30  ;;  %1699 = vmatprep.subr.bf16.mxu1 %v1678_v30 }
 0x185   :  { %v237_v22 = vsel %vm167_vm4, %v215_v21, 0.0  ;;  %1681 = vmatpush3.bf16.msra.mxu0 %v1678_v30  ;;  %1706 = vmatpush3.bf16.msra.mxu1 %v1678_v30  ;;  %v376_v21 = vld [vmem:[%s3030_s2 + $0x40] sm:$0xff]  ;;  %v379_v30 = vld [vmem:[%s3030_s2 + $0x58] sm:$0xff] }
 0x186   :  { %238 = vadd.xlane.f32.xlu1 %v237_v22  ;;  %235 = vadd.xlane.f32.xlu0 %v234_v23  ;;  %v377_v22 = vld [vmem:[%s3030_s2 + $0x48] sm:$0xff]  ;;  %v1694_v39 = vpack.c.bf16 %v379_v30, %v378_v29  ;;  %s1786_s2 = smov 125  }
 0x187   :  { %1683 = vmatprep.subr.bf16.mxu0 %v1682_v42  ;;  %1700 = vmatprep.subr.bf16.mxu1 %v1682_v42  ;;  %v1690_v23 = vpack.c.bf16 %v377_v22, %v376_v21  ;;  %v2075_v21 = vld [vmem:[%s3031_s3] sm:$0xff] }
 0x189   :  { %1685 = vmatpush3.bf16.msra.mxu0 %v1682_v42  ;;  %1707 = vmatpush3.bf16.msra.mxu1 %v1682_v42 }
 0x18a   :  { %1687 = vmatprep.subr.bf16.mxu0 %v1686_v45  ;;  %1701 = vmatprep.subr.bf16.mxu1 %v1686_v45 }
 0x18d   :  { %1689 = vmatpush3.bf16.msra.mxu0 %v1686_v45  ;;  %1708 = vmatpush3.bf16.msra.mxu1 %v1686_v45 }
 0x18e   :  { %1691 = vmatprep.subr.bf16.mxu0 %v1690_v23  ;;  %1702 = vmatprep.subr.bf16.mxu1 %v1690_v23 }
 0x191   :  { %1693 = vmatpush3.bf16.msra.mxu0 %v1690_v23  ;;  %1709 = vmatpush3.bf16.msra.mxu1 %v1690_v23 }
 0x192   :  { %1695 = vmatprep.subr.bf16.mxu0 %v1694_v39  ;;  %1703 = vmatprep.subr.bf16.mxu1 %v1694_v39 }
 0x195   :  { %1697 = vmatpush3.bf16.msra.mxu0 %v1694_v39  ;;  %1710 = vmatpush3.bf16.msra.mxu1 %v1694_v39 }
 0x196   :  { %1650 = vmatprep.subr.msk.mxu0 %vm405_vm5, %v380_v43  ;;  %1704 = vmatprep.subr.msk.mxu1 %vm405_vm5, %v380_v43 }
 0x199   :  { %1651 = vmatpush3.msk.msra.mxu0 %vm405_vm5, %v380_v43  ;;  %1711 = vmatpush3.msk.msra.mxu1 %vm405_vm5, %v380_v43 }
 0x203   :  { %v221_v46 = vpop.xlane.xlu1 %220 }
 0x204   :  { %v241_v49 = vmul.f32 0.01, %v221_v46 }
 0x206   :  { %v249_v50 = vadd.f32 1e-05, %v241_v49 }
 0x207   :  { %v227_v51 = vpop.xlane.xlu1 %226  ;;  %v218_v52 = vpop.xlane.xlu0 %217 }
 0x208   :  { %1739 = vrsqrt.f32 %v249_v50  ;;  %v243_v53 = vmul.f32 0.01, %v227_v51  ;;  %v240_v54 = vmul.f32 0.01, %v218_v52 }
 0x20a   :  { %v251_v55 = vadd.f32 1e-05, %v243_v53  ;;  %v248_v57 = vadd.f32 1e-05, %v240_v54 }
 0x20b   :  { %v224_v58 = vpop.xlane.xlu0 %223 }
 0x20c   :  { %1741 = vrsqrt.f32 %v251_v55  ;;  %v242_v60 = vmul.f32 0.01, %v224_v58 }
 0x20d   :  { %1743 = vrsqrt.f32 %v248_v57 }
 0x20e   :  { %v250_v61 = vadd.f32 1e-05, %v242_v60 }
 0x20f   :  { %v233_v62 = vpop.xlane.xlu1 %232  ;;  %v230_v63 = vpop.xlane.xlu0 %229 }
 0x210   :  { %1745 = vrsqrt.f32 %v250_v61  ;;  %v245_v0 = vmul.f32 0.01, %v233_v62  ;;  %v244_v2 = vmul.f32 0.01, %v230_v63 }
 0x212   :  { %v1740_v3 = vpop.eup %1739  ;;  %v253_v6 = vadd.f32 1e-05, %v245_v0  ;;  %v252_v15 = vadd.f32 1e-05, %v244_v2 }
 0x213   :  { %v239_v16 = vpop.xlane.xlu1 %238  ;;  %v236_v18 = vpop.xlane.xlu0 %235  ;;  %v265_v19 = vmul.f32 %v1740_v3, %v1859_v8 }
 0x214   :  { %1747 = vrsqrt.f32 %v253_v6  ;;  %v247_v20 = vmul.f32 0.01, %v239_v16  ;;  %v246_v26 = vmul.f32 0.01, %v236_v18 }
 0x215   :  { %279 = vperm.xlu1 %1736, %v265_v19   ;;  %1749 = vrsqrt.f32 %v252_v15 }
 0x216   :  { %v1742_v24 = vpop.eup %1741  ;;  %v255_v25 = vadd.f32 1e-05, %v247_v20  ;;  %v254_v42 = vadd.f32 1e-05, %v246_v26 }
 0x217   :  { %v1744_v27 = vpop.eup %1743  ;;  %v267_v28 = vmul.f32 %v1742_v24, %v1880_v11  ;;  %v2093_v24 = vld [vmem:[%s3031_s3 + $0x10] sm:$0xff] }
 0x218   :  { %v264_v8 = vmul.f32 %v1744_v27, %v1850_v5  ;;  %1751 = vrsqrt.f32 %v255_v25  ;;  %v2100_v27 = vld [vmem:[%s3031_s3 + $0x30] sm:$0xff] }
 0x219   :  { %289 = vperm.xlu1 %1736, %v267_v28   ;;  %1753 = vrsqrt.f32 %v254_v42 }
 0x21a   :  { %v1746_v40 = vpop.eup %1745  ;;  %274 = vperm.xlu0 %1737, %v264_v8   ;;  %v2106_v8 = vld [vmem:[%s3031_s3 + $0x20] sm:$0xff] }
 0x21b   :  { %v266_v11 = vmul.f32 %v1746_v40, %v1866_v9 }
 0x21d   :  { %284 = vperm.xlu1 %1736, %v266_v11  }
 0x21e   :  { %v1748_v5 = vpop.eup %1747  ;;  %1738 = vset.pattern.permute.xlu0 %v1784_v7 }
 0x21f   :  { %v269_v44 = vmul.f32 %v1748_v5, %v1896_v13  ;;  %v1750_v45 = vpop.eup %1749 }
 0x220   :  { %v268_v9 = vmul.f32 %v1750_v45, %v1871_v10  ;;  %v2178_v45 = vld [vmem:[%s3031_s3 + $0x50] sm:$0xff] }
 0x221   :  { %299 = vperm.xlu1 %1736, %v269_v44  }
 0x222   :  { %v1752_v46 = vpop.eup %1751 }
 0x223   :  { %v271_v49 = vmul.f32 %v1752_v46, %v1906_v14  ;;  %v1754_v50 = vpop.eup %1753 }
 0x224   :  { %v270_v51 = vmul.f32 %v1754_v50, %v1887_v12 }
 0x225   :  { %294 = vperm.xlu1 %1736, %v268_v9  }
 0x229   :  { %309 = vperm.xlu1 %1736, %v271_v49  }
 0x22d   :  { %304 = vperm.xlu1 %1736, %v270_v51  }
 0x294   :  { %v280_v7 = vpop.permute.xlu1 %279 }
 0x295   :  { %v313_v13 = vmul.f32 %v280_v7, %v1937_v41 }
 0x297   :  { %v353_v10 = vadd.f32 %v1925_v33, %v313_v13 }
 0x298   :  { %v290_v52 = vpop.permute.xlu1 %289 }
 0x299   :  { %v275_v53 = vpop.permute.xlu0 %274  ;;  %v315_v54 = vmul.f32 %v290_v52, %v1943_v48  ;;  %v361_v61 = vmax.f32 %v353_v10, 0.0 }
 0x29a   :  { %v312_v55 = vmul.f32 %v275_v53, %v1941_v47  ;;  %v2210_v53 = vld [vmem:[%s3031_s3 + $0x40] sm:$0xff] }
 0x29b   :  { %v355_v60 = vadd.f32 %v1927_v34, %v315_v54 }
 0x29c   :  { %v352_v57 = vadd.f32 %v1921_v31, %v312_v55  ;;  %v285_v58 = vpop.permute.xlu1 %284 }
 0x29d   :  { %v314_v14 = vmul.f32 %v285_v58, %v1950_v56  ;;  %v363_v47 = vmax.f32 %v355_v60, 0.0 }
 0x29e   :  { %v360_v12 = vmax.f32 %v352_v57, 0.0 }
 0x29f   :  { %v354_v62 = vadd.f32 %v1923_v32, %v314_v14 }
 0x2a0   :  { %1652 = vmatprep.mubr.msk.f32.mxu0 %vm167_vm4, %v360_v12  ;;  %v300_v41 = vpop.permute.xlu1 %299 }
 0x2a1   :  { %1653 = vmatmul.mubr.msk.f32.vlgmr.msra.gmra.mrb[8].mxu0 %vm167_vm4, %v361_v61  ;;  %v362_v48 = vmax.f32 %v354_v62, 0.0  ;;  %v317_v33 = vmul.f32 %v300_v41, %v1958_v1 }
 0x2a3   :  { %1655 = vmatprep.mubr.msk.f32.mxu1 %vm167_vm4, %v362_v48  ;;  %v357_v56 = vadd.f32 %v1931_v36, %v317_v33 }
 0x2a4   :  { %1656 = vmatmul.mubr.msk.f32.vlgmr.msra.gmra.mrb[0].mxu1 %vm167_vm4, %v363_v47  ;;  %v295_v31 = vpop.permute.xlu1 %294 }
 0x2a5   :  { %v316_v34 = vmul.f32 %v295_v31, %v1954_v59  ;;  %v365_v2 = vmax.f32 %v357_v56, 0.0  ;;  %v2274_v56 = vld [vmem:[%s3031_s3 + $0x70] sm:$0xff] }
 0x2a7   :  { %v356_v32 = vadd.f32 %v1929_v35, %v316_v34 }
 0x2a8   :  { %v310_v63 = vpop.permute.xlu1 %309 }
 0x2a9   :  { %v364_v0 = vmax.f32 %v356_v32, 0.0  ;;  %v319_v3 = vmul.f32 %v310_v63, %v1967_v17 }
 0x2ab   :  { %1658 = vmatprep.mubr.msk.f32.mxu1 %vm167_vm4, %v364_v0  ;;  %v359_v15 = vadd.f32 %v1935_v38, %v319_v3 }
 0x2ac   :  { %1659 = vmatmul.mubr.msk.f32.gmra.mrb[2].mxu1 %vm167_vm4, %v365_v2  ;;  %v305_v1 = vpop.permute.xlu1 %304 }
 0x2ad   :  { %v318_v6 = vmul.f32 %v305_v1, %v1963_v4  ;;  %v367_v36 = vmax.f32 %v359_v15, 0.0 }
 0x2af   :  { %v358_v59 = vadd.f32 %v1933_v37, %v318_v6 }
 0x2b1   :  { %v366_v16 = vmax.f32 %v358_v59, 0.0 }
 0x2b3   :  { %1661 = vmatprep.mubr.msk.f32.mxu1 %vm167_vm4, %v366_v16 }
 0x2b4   :  { %1662 = vmatmul.mubr.msk.f32.gmra.mrb[4].mxu1 %vm167_vm4, %v367_v36 }
 0x374   :  { %v1654_v35 = vpop.f32.mrb[8].mxu0 }
 0x375   :  { %980 = vrot.lane.b32.xlu1 %v1654_v35, %s1786_s2  ;;  %576 = vrot.lane.b32.xlu0 %v1654_v35, %s1787_s15  ;;  %v475_v17 = vpop.f32.mrb[9].mxu0  ;;  %v525_v25 = vmul.f32 %v1654_v35, %v2093_v24 }
 0x376   :  { %v524_v22 = vmul.f32 %v2075_v21, %v475_v17 }
 0x377   :  { %v1657_v18 = vpop.f32.mrb[0].mxu1  ;;  %v536_v26 = vsel %vm532_vm6, %v525_v25, 0.0 }
 0x378   :  { %v2051_v4 = vpop.f32.mrb[1].mxu1  ;;  %v533_v23 = vsel %vm532_vm6, %v524_v22, 0.0  ;;  %v527_v28 = vmul.f32 %v1657_v18, %v2100_v27 }
 0x379   :  { %1118 = vrot.lane.b32.xlu1 %v1654_v35, %s1788_s1  ;;  %673 = vrot.lane.b32.xlu0 %v1654_v35, %s1789_s16  ;;  %v526_v30 = vmul.f32 %v2106_v8, %v2051_v4 }
 0x37a   :  { %v542_v29 = vsel %vm532_vm6, %v527_v28, 0.0 }
 0x37b   :  { %v539_v39 = vsel %vm532_vm6, %v526_v30, 0.0 }
 0x37d   :  { %1215 = vrot.lane.b32.xlu1 %v1654_v35, %s1790_s17  ;;  %770 = vrot.lane.b32.xlu0 %v1654_v35, %s1791_s18 }
 0x37f   :  { %v2057_v37 = vpop.f32.mrb[2].mxu1 }
 0x380   :  { %v2059_v38 = vpop.f32.mrb[3].mxu1  ;;  %v529_v9 = vmul.f32 %v2057_v37, %v2178_v45 }
 0x381   :  { %1312 = vrot.lane.b32.xlu1 %v1654_v35, %s1792_s19  ;;  %867 = vrot.lane.b32.xlu0 %v1654_v35, %s1793_s20  ;;  %v528_v55 = vmul.f32 %v2210_v53, %v2059_v38 }
 0x382   :  { %v548_v49 = vsel %vm532_vm6, %v529_v9, 0.0 }
 0x383   :  { %v545_v10 = vsel %vm532_vm6, %v528_v55, 0.0 }
 0x385   :  { %1409 = vrot.lane.b32.xlu1 %v1654_v35, %s1794_s21 }
 0x387   :  { %v2064_v19 = vpop.f32.mrb[4].mxu1 }
 0x388   :  { %v2066_v20 = vpop.f32.mrb[5].mxu1  ;;  %v531_v32 = vmul.f32 %v2064_v19, %v2274_v56 }
 0x389   :  { %574 = vrot.lane.b32.xlu1 %v475_v17, %s1787_s15 }
 0x38a   :  { %v554_v2 = vsel %vm532_vm6, %v531_v32, 0.0 }
 0x38d   :  { %671 = vrot.lane.b32.xlu1 %v475_v17, %s1789_s16 }
 0x391   :  { %768 = vrot.lane.b32.xlu1 %v475_v17, %s1791_s18 }
 0x395   :  { %865 = vrot.lane.b32.xlu1 %v475_v17, %s1793_s20 }
 0x399   :  { %978 = vrot.lane.b32.xlu1 %v475_v17, %s1786_s2 }
 0x39d   :  { %1116 = vrot.lane.b32.xlu1 %v475_v17, %s1788_s1 }
 0x3a0   :  { %534 = vadd.xlane.f32.xlu0 %v533_v23 }
 0x3a1   :  { %1213 = vrot.lane.b32.xlu1 %v475_v17, %s1790_s17 }
 0x3a5   :  { %1310 = vrot.lane.b32.xlu1 %v475_v17, %s1792_s19 }
 0x3a9   :  { %1407 = vrot.lane.b32.xlu1 %v475_v17, %s1794_s21 }
 0x3b6   :  { %1120 = vrot.lane.b32.xlu0 %v2051_v4, %s1788_s1 }
 0x3ba   :  { %1314 = vrot.lane.b32.xlu0 %v2051_v4, %s1792_s19 }
 0x3be   :  { %1411 = vrot.lane.b32.xlu0 %v2051_v4, %s1794_s21 }
 0x3cd   :  { %537 = vadd.xlane.f32.xlu1 %v536_v26 }
 0x3dd   :  { %543 = vadd.xlane.f32.xlu0 %v542_v29 }
 0x3de   :  { %580 = vrot.lane.b32.xlu1 %v1657_v18, %s1787_s15 }
 0x3e1   :  { %540 = vadd.xlane.f32.xlu0 %v539_v39 }
 0x3e2   :  { %677 = vrot.lane.b32.xlu1 %v1657_v18, %s1789_s16 }
 0x3e6   :  { %774 = vrot.lane.b32.xlu1 %v1657_v18, %s1791_s18 }
 0x3e7   :  { %v2143_v40 = vpop.permute.xlu1 %980  ;;  %v2239_v12 = vpop.permute.xlu0 %576 }
 0x3e8   :  { %v1004_v35 = vmul.f32 %v2143_v40, %v2093_v24 }
 0x3ea   :  { %871 = vrot.lane.b32.xlu1 %v1657_v18, %s1793_s20 }
 0x3eb   :  { %v2149_v42 = vpop.permute.xlu1 %1118  ;;  %v2247_v62 = vpop.permute.xlu0 %673 }
 0x3ee   :  { %984 = vrot.lane.b32.xlu1 %v1657_v18, %s1786_s2 }
 0x3ef   :  { %v2157_v11 = vpop.permute.xlu1 %1215  ;;  %v2255_v48 = vpop.permute.xlu0 %770 }
 0x3f2   :  { %1122 = vrot.lane.b32.xlu1 %v1657_v18, %s1788_s1 }
 0x3f3   :  { %v2161_v5 = vpop.permute.xlu1 %1312  ;;  %v2261_v33 = vpop.permute.xlu0 %867 }
 0x3f6   :  { %1219 = vrot.lane.b32.xlu1 %v1657_v18, %s1790_s17 }
 0x3f7   :  { %582 = vrot.lane.b32.xlu0 %v2059_v38, %s1787_s15  ;;  %v2167_v43 = vpop.permute.xlu1 %1409 }
 0x3fa   :  { %1316 = vrot.lane.b32.xlu1 %v1657_v18, %s1792_s19 }
 0x3fb   :  { %679 = vrot.lane.b32.xlu0 %v2059_v38, %s1789_s16  ;;  %v2171_v44 = vpop.permute.xlu1 %574 }
 0x3fc   :  { %v598_v23 = vmul.f32 %v2171_v44, %v2075_v21 }
 0x3fe   :  { %1413 = vrot.lane.b32.xlu1 %v1657_v18, %s1794_s21  ;;  %v2307_v18 = vld [vmem:[%s3031_s3 + $0x18] sm:$0xff] }
 0x3ff   :  { %776 = vrot.lane.b32.xlu0 %v2059_v38, %s1791_s18  ;;  %v2184_v46 = vpop.permute.xlu1 %671 }
 0x400   :  { %v695_v28 = vmul.f32 %v2184_v46, %v2075_v21 }
 0x402   :  { %578 = vrot.lane.b32.xlu1 %v2051_v4, %s1787_s15 }
 0x403   :  { %873 = vrot.lane.b32.xlu0 %v2059_v38, %s1793_s20  ;;  %v2189_v50 = vpop.permute.xlu1 %768 }
 0x406   :  { %675 = vrot.lane.b32.xlu1 %v2051_v4, %s1789_s16 }
 0x407   :  { %986 = vrot.lane.b32.xlu0 %v2059_v38, %s1786_s2  ;;  %v2193_v51 = vpop.permute.xlu1 %865 }
 0x40a   :  { %772 = vrot.lane.b32.xlu1 %v2051_v4, %s1791_s18 }
 0x40b   :  { %1124 = vrot.lane.b32.xlu0 %v2059_v38, %s1788_s1  ;;  %v2195_v7 = vpop.permute.xlu1 %978 }
 0x40c   :  { %v1002_v9 = vmul.f32 %v2195_v7, %v2075_v21 }
 0x40e   :  { %869 = vrot.lane.b32.xlu1 %v2051_v4, %s1793_s20 }
 0x40f   :  { %1221 = vrot.lane.b32.xlu0 %v2059_v38, %s1790_s17  ;;  %v2197_v13 = vpop.permute.xlu1 %1116 }
 0x412   :  { %982 = vrot.lane.b32.xlu1 %v2051_v4, %s1786_s2 }
 0x413   :  { %1318 = vrot.lane.b32.xlu0 %v2059_v38, %s1792_s19  ;;  %v2203_v52 = vpop.permute.xlu1 %1213 }
 0x416   :  { %1217 = vrot.lane.b32.xlu1 %v2051_v4, %s1790_s17  ;;  %v1335_v4 = vmul.f32 %v2161_v5, %v2307_v18  ;;  %v889_v5 = vmul.f32 %v2193_v51, %v2075_v21 }
 0x417   :  { %1415 = vrot.lane.b32.xlu0 %v2059_v38, %s1794_s21  ;;  %v2212_v54 = vpop.permute.xlu1 %1310 }
 0x41a   :  { %584 = vrot.lane.b32.xlu1 %v2057_v37, %s1787_s15 }
 0x41b   :  { %v2221_v57 = vpop.permute.xlu1 %1407 }
 0x41e   :  { %681 = vrot.lane.b32.xlu1 %v2057_v37, %s1789_s16 }
 0x422   :  { %778 = vrot.lane.b32.xlu1 %v2057_v37, %s1791_s18 }
 0x426   :  { %875 = vrot.lane.b32.xlu1 %v2057_v37, %s1793_s20 }
 0x42a   :  { %988 = vrot.lane.b32.xlu1 %v2057_v37, %s1786_s2 }
 0x42d   :  { %v2265_v31 = vpop.xlane.xlu0 %534 }
 0x42e   :  { %1126 = vrot.lane.b32.xlu1 %v2057_v37, %s1788_s1 }
 0x431   :  { %v2280_v63 = vpop.permute.xlu0 %1120 }
 0x432   :  { %1223 = vrot.lane.b32.xlu1 %v2057_v37, %s1790_s17 }
 0x435   :  { %v2285_v3 = vpop.permute.xlu0 %1314 }
 0x436   :  { %1320 = vrot.lane.b32.xlu1 %v2057_v37, %s1792_s19  ;;  %549 = vadd.xlane.f32.xlu0 %v548_v49  ;;  %v599_v49 = vmul.f32 %v2239_v12, %v2093_v24 }
 0x439   :  { %v2289_v6 = vpop.permute.xlu0 %1411 }
 0x43a   :  { %1417 = vrot.lane.b32.xlu1 %v2057_v37, %s1794_s21  ;;  %v2314_v37 = vld [vmem:[%s3031_s3 + $0x60] sm:$0xff] }
 0x43b   :  { %v530_v22 = vmul.f32 %v2314_v37, %v2066_v20 }
 0x43d   :  { %v551_v26 = vsel %vm532_vm6, %v530_v22, 0.0 }
 0x44c   :  { %1130 = vrot.lane.b32.xlu0 %v2064_v19, %s1788_s1 }
 0x450   :  { %1227 = vrot.lane.b32.xlu0 %v2064_v19, %s1790_s17 }
 0x454   :  { %1324 = vrot.lane.b32.xlu0 %v2064_v19, %s1792_s19 }
 0x458   :  { %586 = vrot.lane.b32.xlu0 %v2066_v20, %s1787_s15 }
 0x45a   :  { %v2225_v58 = vpop.xlane.xlu1 %537 }
 0x45c   :  { %683 = vrot.lane.b32.xlu0 %v2066_v20, %s1789_s16 }
 0x45e   :  { %546 = vadd.xlane.f32.xlu1 %v545_v10  ;;  %v2229_v14 = vpop.permute.xlu1 %580 }
 0x460   :  { %780 = vrot.lane.b32.xlu0 %v2066_v20, %s1791_s18 }
 0x462   :  { %v2235_v60 = vpop.permute.xlu1 %677 }
 0x464   :  { %877 = vrot.lane.b32.xlu0 %v2066_v20, %s1793_s20 }
 0x466   :  { %v2245_v61 = vpop.permute.xlu1 %774 }
 0x468   :  { %990 = vrot.lane.b32.xlu0 %v2066_v20, %s1786_s2 }
 0x46a   :  { %v2251_v41 = vpop.permute.xlu1 %871  ;;  %v2293_v59 = vpop.xlane.xlu0 %543 }
 0x46c   :  { %1128 = vrot.lane.b32.xlu0 %v2066_v20, %s1788_s1  ;;  %s1798_s1 = smov 78  }
 0x46e   :  { %v2259_v47 = vpop.permute.xlu1 %984  ;;  %v2297_v36 = vpop.xlane.xlu0 %540 }
 0x46f   :  { %588 = vrot.lane.b32.xlu1 %v2064_v19, %s1787_s15  ;;  %s1797_s15 = smov 103  }
 0x470   :  { %1225 = vrot.lane.b32.xlu0 %v2066_v20, %s1790_s17  ;;  %s1800_s17 = smov 28  }
 0x472   :  { %v2267_v34 = vpop.permute.xlu1 %1122  ;;  %v2316_v38 = vpop.permute.xlu0 %582 }
 0x473   :  { %685 = vrot.lane.b32.xlu1 %v2064_v19, %s1789_s16  ;;  %s1799_s16 = smov 53  }
 0x476   :  { %v2282_v0 = vpop.permute.xlu1 %1219  ;;  %v2326_v25 = vpop.permute.xlu0 %679 }
 0x477   :  { %782 = vrot.lane.b32.xlu1 %v2064_v19, %s1791_s18 }
 0x47a   :  { %v2287_v1 = vpop.permute.xlu1 %1316  ;;  %v2336_v30 = vpop.permute.xlu0 %776 }
 0x47b   :  { %879 = vrot.lane.b32.xlu1 %v2064_v19, %s1793_s20  ;;  %s1801_s20 = smov 106  }
 0x47e   :  { %v2291_v15 = vpop.permute.xlu1 %1413  ;;  %v2344_v44 = vpop.permute.xlu0 %873 }
 0x47f   :  { %992 = vrot.lane.b32.xlu1 %v2064_v19, %s1786_s2  ;;  %s1796_s2 = smov 56  }
 0x482   :  { %v2295_v16 = vpop.permute.xlu1 %578  ;;  %v2357_v55 = vpop.permute.xlu0 %986 }
 0x483   :  { %1421 = vrot.lane.b32.xlu1 %v2064_v19, %s1794_s21 }
 0x486   :  { %v2301_v17 = vpop.permute.xlu1 %675  ;;  %v2370_v32 = vpop.permute.xlu0 %1124 }
 0x487   :  { %1322 = vrot.lane.b32.xlu1 %v2066_v20, %s1792_s19 }
 0x48a   :  { %v2319_v19 = vpop.permute.xlu1 %772 }
 0x48b   :  { %1419 = vrot.lane.b32.xlu1 %v2066_v20, %s1794_s21  ;;  %v792_v20 = vmul.f32 %v2189_v50, %v2075_v21  ;;  %v963_v50 = vld [vmem:[%s3031_s3 + $0x8] sm:$0xff]  ;;  %v696_v21 = vmul.f32 %v2247_v62, %v2093_v24  ;;  %s1802_s21 = smov 81   ;;  %v1008_v62 = vmul.f32 %v2259_v47, %v2100_v27 }
 0x48c   :  { %v1140_v51 = vmul.f32 %v2197_v13, %v963_v50  ;;  %v1237_v12 = vmul.f32 %v2203_v52, %v963_v50  ;;  %v793_v13 = vmul.f32 %v2255_v48, %v2093_v24  ;;  %v890_v52 = vmul.f32 %v2261_v33, %v2093_v24  ;;  %v2390_v48 = vld [vmem:[%s3031_s3 + $0x38] sm:$0xff] }
 0x48d   :  { %v1143_v24 = vmul.f32 %v2267_v34, %v2390_v48  ;;  %v1141_v33 = vmul.f32 %v2149_v42, %v2307_v18  ;;  %v1238_v34 = vmul.f32 %v2157_v11, %v2307_v18  ;;  %v1432_v42 = vmul.f32 %v2167_v43, %v2307_v18 }
 0x48e   :  { %v2331_v29 = vpop.permute.xlu1 %869  ;;  %v1003_v11 = vmul.f32 %v2195_v7, %v963_v50  ;;  %v1334_v43 = vmul.f32 %v2212_v54, %v963_v50  ;;  %v601_v7 = vmul.f32 %v2229_v14, %v2100_v27  ;;  %v967_v54 = vld [vmem:[%s3031_s3 + $0x28] sm:$0xff] }
 0x48f   :  { %555 = vadd.xlane.f32.xlu0 %v554_v2  ;;  %v1431_v2 = vmul.f32 %v2221_v57, %v963_v50  ;;  %v1005_v57 = vmul.f32 %v2143_v40, %v2307_v18  ;;  %v1240_v40 = vmul.f32 %v2282_v0, %v2390_v48 }
 0x492   :  { %v2339_v39 = vpop.permute.xlu1 %982 }
 0x496   :  { %v2348_v46 = vpop.permute.xlu1 %1217 }
 0x49a   :  { %v2363_v10 = vpop.permute.xlu1 %584 }
 0x4a5   :  { %1038 = vrot.lane.b32.xlu0 %v1004_v35, %s1795_s10  ;;  %v2373_v35 = vpop.permute.xlu1 %681 }
 0x4a9   :  { %1352 = vrot.lane.b32.xlu0 %v1335_v4, %s1796_s2  ;;  %v2381_v4 = vpop.permute.xlu0 %1221  ;;  %v2392_v22 = vpop.permute.xlu1 %778 }
 0x4ad   :  { %614 = vrot.lane.b32.xlu0 %v598_v23, %s1797_s15  ;;  %v2400_v23 = vpop.permute.xlu0 %1318 }
 0x4af   :  { %552 = vadd.xlane.f32.xlu1 %v551_v26  ;;  %v2404_v26 = vpop.permute.xlu1 %875 }
 0x4b1   :  { %711 = vrot.lane.b32.xlu0 %v695_v28, %s1798_s1  ;;  %v600_v28 = vmul.f32 %v2295_v16, %v2106_v8  ;;  %v794_v16 = vmul.f32 %v2319_v19, %v2106_v8 }
 0x4b3   :  { %v2418_v0 = vpop.permute.xlu1 %988 }
 0x4b5   :  { %808 = vrot.lane.b32.xlu0 %v792_v20, %s1799_s16  ;;  %v2412_v20 = vpop.permute.xlu0 %1415 }
 0x4b9   :  { %905 = vrot.lane.b32.xlu0 %v889_v5, %s1800_s17  ;;  %v697_v5 = vmul.f32 %v2301_v17, %v2106_v8  ;;  %v891_v17 = vmul.f32 %v2331_v29, %v2106_v8  ;;  %v698_v29 = vmul.f32 %v2235_v60, %v2100_v27  ;;  %v892_v60 = vmul.f32 %v2251_v41, %v2100_v27 }
 0x4ba   :  { %v1337_v41 = vmul.f32 %v2287_v1, %v2390_v48  ;;  %v1007_v1 = vmul.f32 %v2339_v39, %v967_v54 }
 0x4bd   :  { %1034 = vrot.lane.b32.xlu0 %v1002_v9, %s1795_s10 }
 0x4c0   :  { %616 = vrot.lane.b32.xlu1 %v599_v49, %s1797_s15  ;;  %v1127_v49 = vpop.permute.xlu1 %1126 }
 0x4c1   :  { %1156 = vrot.lane.b32.xlu0 %v1140_v51, %s1801_s20  ;;  %v1006_v51 = vmul.f32 %v2339_v39, %v2106_v8  ;;  %v795_v8 = vmul.f32 %v2245_v61, %v2100_v27  ;;  %v1336_v39 = vmul.f32 %v2285_v3, %v967_v54 }
 0x4c3   :  { %v2422_v9 = vpop.xlane.xlu0 %549 }
 0x4c4   :  { %713 = vrot.lane.b32.xlu1 %v696_v21, %s1798_s1  ;;  %v1224_v19 = vpop.permute.xlu1 %1223  ;;  %v1142_v21 = vmul.f32 %v2280_v63, %v967_v54  ;;  %v2469_v63 = vld [vmem:[%s3031_s3 + $0x58] sm:$0xff] }
 0x4c5   :  { %1253 = vrot.lane.b32.xlu0 %v1237_v12, %s1802_s21  ;;  %v1145_v61 = vmul.f32 %v1127_v49, %v2469_v63  ;;  %v1242_v27 = vmul.f32 %v1224_v19, %v2469_v63 }
 0x4c7   :  { %v2432_v18 = vpop.permute.xlu0 %1130 }
 0x4c8   :  { %810 = vrot.lane.b32.xlu1 %v793_v13, %s1799_s16  ;;  %v2452_v14 = vpop.permute.xlu1 %1320  ;;  %v1012_v13 = vmul.f32 %v2418_v0, %v2178_v45 }
 0x4c9   :  { %1447 = vrot.lane.b32.xlu0 %v1431_v2, %s1803_s22 }
 0x4cb   :  { %v2445_v50 = vpop.permute.xlu0 %1227 }
 0x4cc   :  { %907 = vrot.lane.b32.xlu1 %v890_v52, %s1800_s17  ;;  %v2471_v2 = vpop.permute.xlu1 %1417 }
 0x4cd   :  { %1046 = vrot.lane.b32.xlu0 %v1008_v62, %s1795_s10  ;;  %v1009_v62 = vmul.f32 %v2259_v47, %v2390_v48  ;;  %v1434_v47 = vmul.f32 %v2291_v15, %v2390_v48  ;;  %v1239_v15 = vmul.f32 %v2348_v46, %v967_v54  ;;  %v893_v48 = vmul.f32 %v2344_v44, %v2210_v53  ;;  %v971_v44 = vld [vmem:[%s3031_s3 + $0x48] sm:$0xff] }
 0x4ce   :  { %v1433_v46 = vmul.f32 %v2289_v6, %v967_v54  ;;  %v1144_v49 = vmul.f32 %v2370_v32, %v971_v44  ;;  %v700_v6 = vmul.f32 %v2373_v35, %v2178_v45 }
 0x4cf   :  { %v2458_v12 = vpop.permute.xlu0 %1324 }
 0x4d0   :  { %1040 = vrot.lane.b32.xlu1 %v1005_v57, %s1795_s10 }
 0x4d1   :  { %1162 = vrot.lane.b32.xlu0 %v1143_v24, %s1801_s20 }
 0x4d3   :  { %v2474_v52 = vpop.permute.xlu0 %586 }
 0x4d4   :  { %1158 = vrot.lane.b32.xlu1 %v1141_v33, %s1801_s20  ;;  %v602_v33 = vmul.f32 %v2316_v38, %v2210_v53 }
 0x4d5   :  { %1259 = vrot.lane.b32.xlu0 %v1240_v40, %s1802_s21 }
 0x4d7   :  { %v2487_v24 = vpop.permute.xlu0 %683 }
 0x4d8   :  { %1255 = vrot.lane.b32.xlu1 %v1238_v34, %s1802_s21  ;;  %v699_v34 = vmul.f32 %v2326_v25, %v2210_v53 }
 0x4d9   :  { %618 = vrot.lane.b32.xlu0 %v600_v28, %s1797_s15 }
 0x4db   :  { %v2499_v28 = vpop.permute.xlu0 %780 }
 0x4dc   :  { %1449 = vrot.lane.b32.xlu1 %v1432_v42, %s1803_s22  ;;  %v796_v42 = vmul.f32 %v2336_v30, %v2210_v53  ;;  %v1010_v30 = vmul.f32 %v2357_v55, %v2210_v53  ;;  %v603_v53 = vmul.f32 %v2363_v10, %v2178_v45 }
 0x4dd   :  { %715 = vrot.lane.b32.xlu0 %v697_v5, %s1798_s1 }
 0x4df   :  { %v878_v25 = vpop.permute.xlu0 %877 }
 0x4e0   :  { %1036 = vrot.lane.b32.xlu1 %v1003_v11, %s1795_s10 }
 0x4e1   :  { %812 = vrot.lane.b32.xlu0 %v794_v16, %s1799_s16 }
 0x4e3   :  { %v2520_v11 = vpop.permute.xlu0 %990 }
 0x4e4   :  { %1350 = vrot.lane.b32.xlu1 %v1334_v43, %s1796_s2  ;;  %v1241_v43 = vmul.f32 %v2381_v4, %v971_v44  ;;  %v797_v4 = vmul.f32 %v2392_v22, %v2178_v45  ;;  %v1013_v22 = vmul.f32 %v2418_v0, %v2469_v63  ;;  %v1436_v0 = vmul.f32 %v2471_v2, %v2469_v63 }
 0x4e5   :  { %909 = vrot.lane.b32.xlu0 %v891_v17, %s1800_s17 }
 0x4e7   :  { %v1129_v3 = vpop.permute.xlu0 %1128 }
 0x4e8   :  { %620 = vrot.lane.b32.xlu1 %v601_v7, %s1797_s15  ;;  %v2547_v7 = vld [vmem:[%s3031_s3 + $0x78] sm:$0xff] }
 0x4e9   :  { %1042 = vrot.lane.b32.xlu0 %v1006_v51, %s1795_s10  ;;  %v1147_v19 = vmul.f32 %v2432_v18, %v2547_v7  ;;  %v894_v51 = vmul.f32 %v2404_v26, %v2178_v45  ;;  %v1244_v54 = vmul.f32 %v2445_v50, %v2547_v7  ;;  %v1341_v18 = vmul.f32 %v2458_v12, %v2547_v7 }
 0x4ea   :  { %v1339_v45 = vmul.f32 %v2452_v14, %v2469_v63  ;;  %v604_v26 = vmul.f32 %v2474_v52, %v2314_v37  ;;  %v1011_v14 = vmul.f32 %v2357_v55, %v971_v44  ;;  %v1338_v63 = vmul.f32 %v2400_v23, %v971_v44  ;;  %v975_v23 = vld [vmem:[%s3031_s3 + $0x68] sm:$0xff] }
 0x4eb   :  { %v2480_v57 = vpop.xlane.xlu1 %546  ;;  %v1226_v10 = vpop.permute.xlu0 %1225  ;;  %v895_v52 = vmul.f32 %v878_v25, %v2314_v37  ;;  %v1435_v55 = vmul.f32 %v2412_v20, %v971_v44 }
 0x4ec   :  { %717 = vrot.lane.b32.xlu1 %v698_v29, %s1798_s1 }
 0x4ed   :  { %1160 = vrot.lane.b32.xlu0 %v1142_v21, %s1801_s20 }
 0x4ef   :  { %v2491_v40 = vpop.permute.xlu1 %588 }
 0x4f0   :  { %814 = vrot.lane.b32.xlu1 %v795_v8, %s1799_s16  ;;  %v701_v8 = vmul.f32 %v2487_v24, %v2314_v37 }
 0x4f1   :  { %1054 = vrot.lane.b32.xlu0 %v1012_v13, %s1795_s10 }
 0x4f3   :  { %v2504_v38 = vpop.permute.xlu1 %685 }
 0x4f4   :  { %911 = vrot.lane.b32.xlu1 %v892_v60, %s1800_s17  ;;  %v798_v60 = vmul.f32 %v2499_v28, %v2314_v37  ;;  %v702_v20 = vmul.f32 %v2504_v38, %v2274_v56  ;;  %v1243_v28 = vmul.f32 %v1226_v10, %v975_v23 }
 0x4f5   :  { %1166 = vrot.lane.b32.xlu0 %v1145_v61, %s1801_s20 }
 0x4f7   :  { %v2513_v5 = vpop.permute.xlu1 %782 }
 0x4f8   :  { %1048 = vrot.lane.b32.xlu1 %v1009_v62, %s1795_s10 }
 0x4f9   :  { %1263 = vrot.lane.b32.xlu0 %v1242_v27, %s1802_s21  ;;  %v1014_v27 = vmul.f32 %v2520_v11, %v2314_v37 }
 0x4fb   :  { %v2528_v16 = vpop.permute.xlu1 %879 }
 0x4fc   :  { %1356 = vrot.lane.b32.xlu1 %v1337_v41, %s1796_s2  ;;  %v896_v38 = vmul.f32 %v2528_v16, %v2274_v56  ;;  %v1015_v16 = vmul.f32 %v2520_v11, %v975_v23 }
 0x4fd   :  { %622 = vrot.lane.b32.xlu0 %v602_v33, %s1797_s15  ;;  %v605_v33 = vmul.f32 %v2491_v40, %v2274_v56  ;;  %v799_v40 = vmul.f32 %v2513_v5, %v2274_v56 }
 0x4ff   :  { %v2536_v17 = vpop.permute.xlu1 %992 }
 0x500   :  { %1453 = vrot.lane.b32.xlu1 %v1434_v47, %s1803_s22  ;;  %v1016_v32 = vmul.f32 %v2536_v17, %v2274_v56  ;;  %v1146_v47 = vmul.f32 %v1129_v3, %v975_v23 }
 0x501   :  { %719 = vrot.lane.b32.xlu0 %v699_v34, %s1798_s1 }
 0x503   :  { %v1422_v12 = vpop.permute.xlu1 %1421 }
 0x504   :  { %1044 = vrot.lane.b32.xlu1 %v1007_v1, %s1795_s10  ;;  %v1438_v44 = vmul.f32 %v1422_v12, %v2547_v7 }
 0x505   :  { %816 = vrot.lane.b32.xlu0 %v796_v42, %s1799_s16 }
 0x507   :  { %v1323_v2 = vpop.permute.xlu1 %1322 }
 0x508   :  { %1257 = vrot.lane.b32.xlu1 %v1239_v15, %s1802_s21 }
 0x509   :  { %913 = vrot.lane.b32.xlu0 %v893_v48, %s1800_s17 }
 0x50b   :  { %v1420_v41 = vpop.permute.xlu1 %1419 }
 0x50c   :  { %1354 = vrot.lane.b32.xlu1 %v1336_v39, %s1796_s2 }
 0x50d   :  { %1050 = vrot.lane.b32.xlu0 %v1010_v30, %s1795_s10  ;;  %v1017_v30 = vmul.f32 %v2536_v17, %v2547_v7 }
 0x510   :  { %1451 = vrot.lane.b32.xlu1 %v1433_v46, %s1803_s22 }
 0x511   :  { %1164 = vrot.lane.b32.xlu0 %v1144_v49, %s1801_s20 }
 0x514   :  { %624 = vrot.lane.b32.xlu1 %v603_v53, %s1797_s15 }
 0x515   :  { %1261 = vrot.lane.b32.xlu0 %v1241_v43, %s1802_s21  ;;  %v1340_v43 = vmul.f32 %v1323_v2, %v975_v23 }
 0x518   :  { %721 = vrot.lane.b32.xlu1 %v700_v6, %s1798_s1 }
 0x519   :  { %1062 = vrot.lane.b32.xlu0 %v1016_v32, %s1795_s10  ;;  %v1437_v32 = vmul.f32 %v1420_v41, %v975_v23 }
 0x51c   :  { %818 = vrot.lane.b32.xlu1 %v797_v4, %s1799_s16  ;;  %v2556_v35 = vpop.xlane.xlu0 %555 }
 0x51d   :  { %1170 = vrot.lane.b32.xlu0 %v1147_v19, %s1801_s20 }
 0x520   :  { %915 = vrot.lane.b32.xlu1 %v894_v51, %s1800_s17  ;;  %v2564_v29 = vpop.permute.xlu0 %1038 }
 0x521   :  { %1267 = vrot.lane.b32.xlu0 %v1244_v54, %s1802_s21 }
 0x524   :  { %1056 = vrot.lane.b32.xlu1 %v1013_v22, %s1795_s10  ;;  %v2572_v21 = vpop.permute.xlu0 %1352 }
 0x525   :  { %1364 = vrot.lane.b32.xlu0 %v1341_v18, %s1796_s2 }
 0x528   :  { %1360 = vrot.lane.b32.xlu1 %v1339_v45, %s1796_s2  ;;  %v2580_v50 = vpop.permute.xlu0 %614 }
 0x529   :  { %626 = vrot.lane.b32.xlu0 %v604_v26, %s1797_s15  ;;  %v638_v18 = vsel %vm532_vm6, %v2580_v50, 0.0 }
 0x52c   :  { %1457 = vrot.lane.b32.xlu1 %v1436_v0, %s1803_s22  ;;  %v2588_v13 = vpop.permute.xlu0 %711 }
 0x52d   :  { %723 = vrot.lane.b32.xlu0 %v701_v8, %s1798_s1  ;;  %v735_v0 = vsel %vm532_vm6, %v2588_v13, 0.0 }
 0x530   :  { %1052 = vrot.lane.b32.xlu1 %v1011_v14, %s1795_s10  ;;  %v2595_v61 = vpop.permute.xlu0 %808 }
 0x531   :  { %820 = vrot.lane.b32.xlu0 %v798_v60, %s1799_s16  ;;  %v832_v12 = vsel %vm532_vm6, %v2595_v61, 0.0 }
 0x534   :  { %1358 = vrot.lane.b32.xlu1 %v1338_v63, %s1796_s2  ;;  %v2601_v62 = vpop.permute.xlu0 %905 }
 0x535   :  { %917 = vrot.lane.b32.xlu0 %v895_v52, %s1800_s17  ;;  %v929_v50 = vsel %vm532_vm6, %v2601_v62, 0.0 }
 0x538   :  { %1455 = vrot.lane.b32.xlu1 %v1435_v55, %s1803_s22  ;;  %v2608_v24 = vpop.permute.xlu0 %1034 }
 0x539   :  { %1058 = vrot.lane.b32.xlu0 %v1014_v27, %s1795_s10 }
 0x53c   :  { %v2616_v34 = vpop.xlane.xlu1 %552  ;;  %628 = vrot.lane.b32.xlu1 %v605_v33, %s1797_s15  ;;  %v2619_v37 = vpop.permute.xlu0 %1156 }
 0x53d   :  { %1168 = vrot.lane.b32.xlu0 %v1146_v47, %s1801_s20 }
 0x540   :  { %v2624_v1 = vpop.permute.xlu1 %616  ;;  %725 = vrot.lane.b32.xlu1 %v702_v20, %s1798_s1  ;;  %v1254_v42 = vpop.permute.xlu0 %1253 }
 0x541   :  { %1265 = vrot.lane.b32.xlu0 %v1243_v28, %s1802_s21  ;;  %v1277_v61 = vsel %vm532_vm6, %v1254_v42, 0.0  ;;  %v641_v62 = vsel %vm532_vm6, %v2624_v1, 0.0 }
 0x544   :  { %v2630_v15 = vpop.permute.xlu1 %713  ;;  %822 = vrot.lane.b32.xlu1 %v799_v40, %s1799_s16  ;;  %v2633_v25 = vpop.permute.xlu0 %1447 }
 0x545   :  { %v738_v47 = vsel %vm532_vm6, %v2630_v15, 0.0  ;;  %v1471_v20 = vsel %vm532_vm6, %v2633_v25, 0.0 }
 0x548   :  { %v2637_v48 = vpop.permute.xlu1 %810  ;;  %919 = vrot.lane.b32.xlu1 %v896_v38, %s1800_s17  ;;  %v2640_v39 = vpop.permute.xlu0 %1046 }
 0x549   :  { %v835_v1 = vsel %vm532_vm6, %v2637_v48, 0.0 }
 0x54c   :  { %v908_v46 = vpop.permute.xlu1 %907  ;;  %1064 = vrot.lane.b32.xlu1 %v1017_v30, %s1795_s10  ;;  %v2645_v5 = vpop.permute.xlu0 %1162 }
 0x54d   :  { %v932_v11 = vsel %vm532_vm6, %v908_v46, 0.0 }
 0x550   :  { %v1041_v49 = vpop.permute.xlu1 %1040  ;;  %1461 = vrot.lane.b32.xlu1 %v1438_v44, %s1803_s22  ;;  %v2649_v56 = vpop.permute.xlu0 %1259  ;;  %v1377_v44 = vsel %vm532_vm6, %v2572_v21, 0.0 }
 0x551   :  { %v1068_v63 = vsel %vm1066_vm7, %v2564_v29, %v1041_v49  ;;  %v1286_v21 = vsel %vm532_vm6, %v2649_v56, 0.0 }
 0x552   :  { %v1086_v13 = vsel %vm532_vm6, %v1068_v63, 0.0 }
 0x554   :  { %v1159_v53 = vpop.permute.xlu1 %1158  ;;  %1060 = vrot.lane.b32.xlu1 %v1015_v16, %s1795_s10  ;;  %v2653_v3 = vpop.permute.xlu0 %618  ;;  %s1804_s10 = smov [#allocation2]  }
 0x555   :  { %v1183_v51 = vsel %vm532_vm6, %v1159_v53, 0.0  ;;  %v644_v56 = vsel %vm532_vm6, %v2653_v3, 0.0  ;;  %s1547_s11 = sshll.u32 %s1804_s10, 4  ;;  %s1548_s11 = int_to_ptr.vmem [resolvable:$true] %s1547_s11 }
 0x556   :  { %s1763_s12 = scalar_lea.vmem %s1548_s11, 32  ;;  %p1764_p1 = scmp.lt.s32.totalorder %s1548_s11, %s1548_s11 }
 0x558   :  { %v1256_v17 = vpop.permute.xlu1 %1255  ;;  %1362 = vrot.lane.b32.xlu1 %v1340_v43, %s1796_s2  ;;  %v2656_v6 = vpop.permute.xlu0 %715 }
 0x559   :  { %v1280_v30 = vsel %vm532_vm6, %v1256_v17, 0.0 }
 0x55c   :  { %v2658_v7 = vpop.permute.xlu1 %1449  ;;  %1459 = vrot.lane.b32.xlu1 %v1437_v32, %s1803_s22  ;;  %v2661_v10 = vpop.permute.xlu0 %812  ;;  %v1180_v32 = vsel %vm532_vm6, %v2619_v37, 0.0  ;;  %v1189_v37 = vsel %vm532_vm6, %v2645_v5, 0.0 }
 0x55d   :  { %v1474_v16 = vsel %vm532_vm6, %v2658_v7, 0.0  ;;  %v838_v5 = vsel %vm532_vm6, %v2661_v10, 0.0 }
 0x560   :  { %v2664_v4 = vpop.permute.xlu1 %1036  ;;  %933 = vadd.xlane.f32.xlu0 %v932_v11  ;;  %v2666_v19 = vpop.permute.xlu0 %909 }
 0x561   :  { %v1067_v11 = vsel %vm1066_vm7, %v2608_v24, %v2664_v4  ;;  %v935_v63 = vsel %vm532_vm6, %v2666_v19, 0.0 }
 0x564   :  { %v1351_v54 = vpop.permute.xlu1 %1350  ;;  %1184 = vadd.xlane.f32.xlu0 %v1183_v51  ;;  %v2669_v22 = vpop.permute.xlu0 %1042 }
 0x565   :  { %v1374_v29 = vsel %vm532_vm6, %v1351_v54, 0.0  ;;  %v1083_v54 = vsel %vm532_vm6, %v1067_v11, 0.0 }
 0x568   :  { %v621_v45 = vpop.permute.xlu1 %620  ;;  %639 = vadd.xlane.f32.xlu0 %v638_v18  ;;  %v2673_v26 = vpop.permute.xlu0 %1160 }
 0x569   :  { %v647_v42 = vsel %vm532_vm6, %v621_v45, 0.0  ;;  %v1186_v3 = vsel %vm532_vm6, %v2673_v26, 0.0 }
 0x56c   :  { %v718_v8 = vpop.permute.xlu1 %717  ;;  %736 = vadd.xlane.f32.xlu0 %v735_v0  ;;  %v2679_v60 = vpop.permute.xlu0 %1054 }
 0x56d   :  { %v744_v15 = vsel %vm532_vm6, %v718_v8, 0.0  ;;  %v741_v8 = vsel %vm532_vm6, %v2656_v6, 0.0 }
 0x570   :  { %v815_v14 = vpop.permute.xlu1 %814  ;;  %833 = vadd.xlane.f32.xlu0 %v832_v12  ;;  %v2685_v52 = vpop.permute.xlu0 %1166 }
 0x571   :  { %v841_v48 = vsel %vm532_vm6, %v815_v14, 0.0 }
 0x574   :  { %v912_v2 = vpop.permute.xlu1 %911  ;;  %930 = vadd.xlane.f32.xlu0 %v929_v50  ;;  %v2691_v41 = vpop.permute.xlu0 %1263 }
 0x575   :  { %v938_v53 = vsel %vm532_vm6, %v912_v2, 0.0 }
 0x578   :  { %v2688_v55 = vpop.permute.xlu1 %1048  ;;  %1087 = vadd.xlane.f32.xlu0 %v1086_v13  ;;  %v2696_v33 = vpop.permute.xlu0 %622 }
 0x579   :  { %v1070_v6 = vsel %vm1066_vm7, %v2640_v39, %v2688_v55 }
 0x57a   :  { %v1092_v10 = vsel %vm532_vm6, %v1070_v6, 0.0 }
 0x57c   :  { %v1357_v27 = vpop.permute.xlu1 %1356  ;;  %1278 = vadd.xlane.f32.xlu0 %v1277_v61  ;;  %v2707_v38 = vpop.permute.xlu0 %719 }
 0x57d   :  { %v1383_v18 = vsel %vm532_vm6, %v1357_v27, 0.0 }
 0x580   :  { %v1454_v23 = vpop.permute.xlu1 %1453  ;;  %642 = vadd.xlane.f32.xlu1 %v641_v62  ;;  %1375 = vadd.xlane.f32.xlu0 %v1374_v29  ;;  %v2711_v25 = vpop.permute.xlu0 %816 }
 0x581   :  { %v1480_v4 = vsel %vm532_vm6, %v1454_v23, 0.0 }
 0x584   :  { %v2702_v28 = vpop.permute.xlu1 %1044  ;;  %739 = vadd.xlane.f32.xlu1 %v738_v47  ;;  %1472 = vadd.xlane.f32.xlu0 %v1471_v20  ;;  %v2719_v17 = vpop.permute.xlu0 %913  ;;  %v1195_v47 = vsel %vm532_vm6, %v2685_v52, 0.0 }
 0x585   :  { %v1069_v27 = vsel %vm1066_vm7, %v2669_v22, %v2702_v28 }
 0x586   :  { %v1089_v55 = vsel %vm532_vm6, %v1069_v27, 0.0  ;;  %v514_v27 = vlaneseq }
 0x588   :  { %v1258_v40 = vpop.permute.xlu1 %1257  ;;  %836 = vadd.xlane.f32.xlu1 %v835_v1  ;;  %648 = vadd.xlane.f32.xlu0 %v647_v42  ;;  %v2728_v7 = vpop.permute.xlu0 %1050 }
 0x589   :  { %v1283_v2 = vsel %vm532_vm6, %v1258_v40, 0.0 }
 0x58c   :  { %v1355_v46 = vpop.permute.xlu1 %1354  ;;  %1281 = vadd.xlane.f32.xlu1 %v1280_v30  ;;  %745 = vadd.xlane.f32.xlu0 %v744_v15  ;;  %v1165_v24 = vpop.permute.xlu0 %1164  ;;  %v650_v30 = vsel %vm532_vm6, %v2696_v33, 0.0 }
 0x58d   :  { %v1380_v39 = vsel %vm532_vm6, %v1355_v46, 0.0  ;;  %v747_v46 = vsel %vm532_vm6, %v2707_v38, 0.0 }
 0x590   :  { %v1452_v49 = vpop.permute.xlu1 %1451  ;;  %1378 = vadd.xlane.f32.xlu1 %v1377_v44  ;;  %842 = vadd.xlane.f32.xlu0 %v841_v48  ;;  %v2739_v14 = vpop.permute.xlu0 %1261  ;;  %v1292_v48 = vsel %vm532_vm6, %v2691_v41, 0.0  ;;  %v941_v41 = vsel %vm532_vm6, %v2719_v17, 0.0 }
 0x591   :  { %v1477_v26 = vsel %vm532_vm6, %v1452_v49, 0.0  ;;  %v844_v49 = vsel %vm532_vm6, %v2711_v25, 0.0 }
 0x594   :  { %v625_v43 = vpop.permute.xlu1 %624  ;;  %1475 = vadd.xlane.f32.xlu1 %v1474_v16  ;;  %939 = vadd.xlane.f32.xlu0 %v938_v53  ;;  %v2751_v61 = vpop.permute.xlu0 %1062 }
 0x595   :  { %v653_v23 = vsel %vm532_vm6, %v625_v43, 0.0  ;;  %v1192_v43 = vsel %vm532_vm6, %v1165_v24, 0.0 }
 0x598   :  { %v722_v51 = vpop.permute.xlu1 %721  ;;  %1181 = vadd.xlane.f32.xlu1 %v1180_v32  ;;  %1287 = vadd.xlane.f32.xlu0 %v1286_v21  ;;  %v2758_v62 = vpop.permute.xlu0 %1170 }
 0x599   :  { %v750_v28 = vsel %vm532_vm6, %v722_v51, 0.0  ;;  %v1289_v51 = vsel %vm532_vm6, %v2739_v14, 0.0 }
 0x59c   :  { %v819_v45 = vpop.permute.xlu1 %818  ;;  %1084 = vadd.xlane.f32.xlu1 %v1083_v54  ;;  %1384 = vadd.xlane.f32.xlu0 %v1383_v18  ;;  %v2765_v22 = vpop.permute.xlu0 %1267 }
 0x59d   :  { %v847_v40 = vsel %vm532_vm6, %v819_v45, 0.0 }
 0x5a0   :  { %v916_v0 = vpop.permute.xlu1 %915  ;;  %1190 = vadd.xlane.f32.xlu1 %v1189_v37  ;;  %645 = vadd.xlane.f32.xlu0 %v644_v56  ;;  %v2769_v42 = vpop.permute.xlu0 %1364 }
 0x5a1   :  { %v944_v15 = vsel %vm532_vm6, %v916_v0, 0.0 }
 0x5a4   :  { %v1057_v12 = vpop.permute.xlu1 %1056  ;;  %1481 = vadd.xlane.f32.xlu1 %v1480_v4  ;;  %742 = vadd.xlane.f32.xlu0 %v741_v8  ;;  %v627_v44 = vpop.permute.xlu0 %626 }
 0x5a5   :  { %v1072_v38 = vsel %vm1066_vm7, %v2679_v60, %v1057_v12  ;;  %v656_v56 = vsel %vm532_vm6, %v627_v44, 0.0 }
 0x5a6   :  { %v1098_v21 = vsel %vm532_vm6, %v1072_v38, 0.0 }
 0x5a8   :  { %v1361_v50 = vpop.permute.xlu1 %1360  ;;  %839 = vadd.xlane.f32.xlu0 %v838_v5  ;;  %1187 = vadd.xlane.f32.xlu1 %v1186_v3  ;;  %v724_v53 = vpop.permute.xlu0 %723 }
 0x5a9   :  { %v1389_v33 = vsel %vm532_vm6, %v1361_v50, 0.0 }
 0x5ac   :  { %v1458_v13 = vpop.permute.xlu1 %1457  ;;  %936 = vadd.xlane.f32.xlu0 %v935_v63  ;;  %1284 = vadd.xlane.f32.xlu1 %v1283_v2  ;;  %v821_v25 = vpop.permute.xlu0 %820 }
 0x5ad   :  { %v1486_v20 = vsel %vm532_vm6, %v1458_v13, 0.0  ;;  %v850_v12 = vsel %vm532_vm6, %v821_v25, 0.0  ;;  %v1201_v13 = vsel %vm532_vm6, %v2758_v62, 0.0 }
 0x5b0   :  { %v1053_v19 = vpop.permute.xlu1 %1052  ;;  %1093 = vadd.xlane.f32.xlu0 %v1092_v10  ;;  %1478 = vadd.xlane.f32.xlu1 %v1477_v26  ;;  %v918_v18 = vpop.permute.xlu0 %917 }
 0x5b1   :  { %v1071_v54 = vsel %vm1066_vm7, %v2728_v7, %v1053_v19  ;;  %v753_v7 = vsel %vm532_vm6, %v724_v53, 0.0  ;;  %v947_v62 = vsel %vm532_vm6, %v918_v18, 0.0 }
 0x5b2   :  { %v1095_v17 = vsel %vm532_vm6, %v1071_v54, 0.0 }
 0x5b4   :  { %1381 = vadd.xlane.f32.xlu0 %v1380_v39  ;;  %1090 = vadd.xlane.f32.xlu1 %v1089_v55  ;;  %v1359_v29 = vpop.permute.xlu1 %1358  ;;  %v1059_v24 = vpop.permute.xlu0 %1058  ;;  %v1298_v55 = vsel %vm532_vm6, %v2765_v22, 0.0 }
 0x5b5   :  { %v1386_v45 = vsel %vm532_vm6, %v1359_v29, 0.0  ;;  %v2812_v29 = vand.u32 127, %v514_v27 }
 0x5b7   :  { %vm557_vm8 = vcmp.eq.s32.totalorder %v2812_v29, 0  ;;  %vm662_vm9 = vcmp.eq.s32.totalorder %v2812_v29, 1  ;;  %vm759_vm10 = vcmp.eq.s32.totalorder %v2812_v29, 2  ;;  %vm856_vm11 = vcmp.eq.s32.totalorder %v2812_v29, 3 }
 0x5b8   :  { %654 = vadd.xlane.f32.xlu0 %v653_v23  ;;  %1196 = vadd.xlane.f32.xlu1 %v1195_v47  ;;  %v1456_v1 = vpop.permute.xlu1 %1455  ;;  %v1169_v14 = vpop.permute.xlu0 %1168  ;;  %vm953_vm12 = vcmp.eq.s32.totalorder %v2812_v29, 4  ;;  %v559_v38 = vsel %vm557_vm8, %v2225_v58, 0.0  ;;  %vm1107_vm13 = vcmp.eq.s32.totalorder %v2812_v29, 5  ;;  %vm1204_vm14 = vcmp.eq.s32.totalorder %v2812_v29, 6 }
 0x5b9   :  { %v1483_v11 = vsel %vm532_vm6, %v1456_v1, 0.0  ;;  %v1198_v50 = vsel %vm532_vm6, %v1169_v14, 0.0  ;;  %vm1301_vm15 = vcmp.eq.s32.totalorder %v2812_v29, 7  ;;  %vm1398_vm0 = vcmp.eq.s32.totalorder %v2812_v29, 8 }
 0x5ba   :  { %vm1495_vm1 = vcmp.eq.s32.totalorder %v2812_v29, 9 }
 0x5bc   :  { %751 = vadd.xlane.f32.xlu0 %v750_v28  ;;  %1487 = vadd.xlane.f32.xlu1 %v1486_v20  ;;  %v629_v52 = vpop.permute.xlu1 %628  ;;  %v1266_v6 = vpop.permute.xlu0 %1265 }
 0x5bd   :  { %v659_v0 = vsel %vm532_vm6, %v629_v52, 0.0  ;;  %v1295_v22 = vsel %vm532_vm6, %v1266_v6, 0.0 }
 0x5c0   :  { %848 = vadd.xlane.f32.xlu0 %v847_v40  ;;  %651 = vadd.xlane.f32.xlu1 %v650_v30  ;;  %v726_v16 = vpop.permute.xlu1 %725  ;;  %v558_v40 = vsel %vm557_vm8, %v2265_v31, 0.0 }
 0x5c1   :  { %v756_v4 = vsel %vm532_vm6, %v726_v16, 0.0 }
 0x5c4   :  { %945 = vadd.xlane.f32.xlu0 %v944_v15  ;;  %748 = vadd.xlane.f32.xlu1 %v747_v46  ;;  %v823_v32 = vpop.permute.xlu1 %822  ;;  %v1395_v46 = vsel %vm532_vm6, %v2769_v42, 0.0 }
 0x5c5   :  { %v853_v5 = vsel %vm532_vm6, %v823_v32, 0.0 }
 0x5c8   :  { %1293 = vadd.xlane.f32.xlu0 %v1292_v48  ;;  %845 = vadd.xlane.f32.xlu1 %v844_v49  ;;  %v920_v60 = vpop.permute.xlu1 %919 }
 0x5c9   :  { %v950_v63 = vsel %vm532_vm6, %v920_v60, 0.0  ;;  %v561_v60 = vsel %vm557_vm8, %v2293_v59, 0.0 }
 0x5cc   :  { %1390 = vadd.xlane.f32.xlu0 %v1389_v33  ;;  %1193 = vadd.xlane.f32.xlu1 %v1192_v43  ;;  %v1065_v37 = vpop.permute.xlu1 %1064 }
 0x5cd   :  { %v1074_v2 = vsel %vm1066_vm7, %v2751_v61, %v1065_v37 }
 0x5ce   :  { %v1104_v10 = vsel %vm532_vm6, %v1074_v2, 0.0 }
 0x5d0   :  { %942 = vadd.xlane.f32.xlu0 %v941_v41  ;;  %1099 = vadd.xlane.f32.xlu1 %v1098_v21  ;;  %v1462_v8 = vpop.permute.xlu1 %1461 }
 0x5d1   :  { %v1492_v44 = vsel %vm532_vm6, %v1462_v8, 0.0 }
 0x5d4   :  { %1484 = vadd.xlane.f32.xlu1 %v1483_v11  ;;  %1290 = vadd.xlane.f32.xlu0 %v1289_v51  ;;  %v1061_v3 = vpop.permute.xlu1 %1060 }
 0x5d5   :  { %v1073_v61 = vsel %vm1066_vm7, %v1059_v24, %v1061_v3 }
 0x5d6   :  { %v1101_v47 = vsel %vm532_vm6, %v1073_v61, 0.0 }
 0x5d8   :  { %1096 = vadd.xlane.f32.xlu1 %v1095_v17  ;;  %1387 = vadd.xlane.f32.xlu0 %v1386_v45  ;;  %v1363_v26 = vpop.permute.xlu1 %1362 }
 0x5d9   :  { %v1392_v39 = vsel %vm532_vm6, %v1363_v26, 0.0 }
 0x5dc   :  { %660 = vadd.xlane.f32.xlu0 %v659_v0  ;;  %657 = vadd.xlane.f32.xlu1 %v656_v56  ;;  %v1460_v20 = vpop.permute.xlu1 %1459 }
 0x5dd   :  { %v1489_v1 = vsel %vm532_vm6, %v1460_v20, 0.0 }
 0x5e0   :  { %757 = vadd.xlane.f32.xlu0 %v756_v4  ;;  %754 = vadd.xlane.f32.xlu1 %v753_v7 }
 0x5e4   :  { %854 = vadd.xlane.f32.xlu0 %v853_v5  ;;  %851 = vadd.xlane.f32.xlu1 %v850_v12 }
 0x5e8   :  { %951 = vadd.xlane.f32.xlu0 %v950_v63  ;;  %1199 = vadd.xlane.f32.xlu1 %v1198_v50 }
 0x5ec   :  { %1202 = vadd.xlane.f32.xlu0 %v1201_v13  ;;  %1105 = vadd.xlane.f32.xlu1 %v1104_v10 }
 0x5ed   :  { %v934_v19 = vpop.xlane.xlu0 %933 }
 0x5f0   :  { %1299 = vadd.xlane.f32.xlu0 %v1298_v55  ;;  %1393 = vadd.xlane.f32.xlu1 %v1392_v39 }
 0x5f1   :  { %v1185_v23 = vpop.xlane.xlu0 %1184 }
 0x5f4   :  { %948 = vadd.xlane.f32.xlu0 %v947_v62  ;;  %1102 = vadd.xlane.f32.xlu1 %v1101_v47  ;;  %v560_v62 = vsel %vm557_vm8, %v2297_v36, 0.0 }
 0x5f5   :  { %v640_v28 = vpop.xlane.xlu0 %639 }
 0x5f6   :  { %v663_v30 = vsel %vm662_vm9, %v640_v28, %v558_v40 }
 0x5f8   :  { %1490 = vadd.xlane.f32.xlu1 %v1489_v1  ;;  %1296 = vadd.xlane.f32.xlu0 %v1295_v22 }
 0x5f9   :  { %v737_v52 = vpop.xlane.xlu0 %736 }
 0x5fa   :  { %v760_v15 = vsel %vm759_vm10, %v737_v52, %v663_v30 }
 0x5fc   :  { %1493 = vadd.xlane.f32.xlu1 %v1492_v44  ;;  %1396 = vadd.xlane.f32.xlu0 %v1395_v46 }
 0x5fd   :  { %v834_v48 = vpop.xlane.xlu0 %833 }
 0x5fe   :  { %v857_v31 = vsel %vm856_vm11, %v834_v48, %v760_v15 }
 0x601   :  { %v931_v49 = vpop.xlane.xlu0 %930 }
 0x602   :  { %v954_v16 = vsel %vm953_vm12, %v931_v49, %v857_v31 }
 0x605   :  { %v1088_v33 = vpop.xlane.xlu0 %1087 }
 0x609   :  { %v1279_v53 = vpop.xlane.xlu0 %1278 }
 0x60d   :  { %v643_v43 = vpop.xlane.xlu1 %642  ;;  %v1376_v42 = vpop.xlane.xlu0 %1375 }
 0x60e   :  { %v664_v32 = vsel %vm662_vm9, %v643_v43, %v559_v38 }
 0x611   :  { %v740_v41 = vpop.xlane.xlu1 %739  ;;  %v1473_v21 = vpop.xlane.xlu0 %1472 }
 0x612   :  { %v761_v25 = vsel %vm759_vm10, %v740_v41, %v664_v32 }
 0x615   :  { %v837_v11 = vpop.xlane.xlu1 %836  ;;  %v649_v51 = vpop.xlane.xlu0 %648 }
 0x616   :  { %v858_v54 = vsel %vm856_vm11, %v837_v11, %v761_v25  ;;  %v666_v45 = vsel %vm662_vm9, %v649_v51, %v561_v60 }
 0x617   :  { %v955_v58 = vsel %vm953_vm12, %v934_v19, %v858_v54 }
 0x618   :  { %v1109_v18 = vsel %vm1107_vm13, %v1088_v33, %v955_v58 }
 0x619   :  { %v1282_v17 = vpop.xlane.xlu1 %1281  ;;  %v1206_v37 = vsel %vm1204_vm14, %v1185_v23, %v1109_v18  ;;  %v746_v56 = vpop.xlane.xlu0 %745 }
 0x61a   :  { %v1303_v0 = vsel %vm1301_vm15, %v1282_v17, %v1206_v37  ;;  %v763_v24 = vsel %vm759_vm10, %v746_v56, %v666_v45 }
 0x61d   :  { %v1379_v59 = vpop.xlane.xlu1 %1378  ;;  %v843_v7 = vpop.xlane.xlu0 %842 }
 0x61e   :  { %v1400_v4 = vsel %vm1398_vm0, %v1379_v59, %v1303_v0  ;;  %v860_v8 = vsel %vm856_vm11, %v843_v7, %v763_v24 }
 0x621   :  { %v1476_v12 = vpop.xlane.xlu1 %1475  ;;  %v940_v14 = vpop.xlane.xlu0 %939 }
 0x622   :  { %v1497_v5 = vsel %vm1495_vm1, %v1476_v12, %v1400_v4  ;;  %v957_v3 = vsel %vm953_vm12, %v940_v14, %v860_v8 }
 0x623   :  { %v1506_v61 = vsel %vm1504_vm2, %v1497_v5, 0.0 }
 0x625   :  { %v1182_v50 = vpop.xlane.xlu1 %1181  ;;  %v1288_v63 = vpop.xlane.xlu0 %1287 }
 0x629   :  { %v1085_v2 = vpop.xlane.xlu1 %1084  ;;  %v1385_v6 = vpop.xlane.xlu0 %1384 }
 0x62a   :  { %v1108_v13 = vsel %vm1107_vm13, %v1085_v2, %v954_v16 }
 0x62b   :  { %v1205_v10 = vsel %vm1204_vm14, %v1182_v50, %v1108_v13  ;;  %v562_v13 = vsel %vm557_vm8, %v2480_v57, 0.0  ;;  %v563_v57 = vsel %vm557_vm8, %v2422_v9, 0.0 }
 0x62c   :  { %v1302_v26 = vsel %vm1301_vm15, %v1279_v53, %v1205_v10 }
 0x62d   :  { %v1399_v27 = vsel %vm1398_vm0, %v1376_v42, %v1302_v26  ;;  %v1191_v19 = vpop.xlane.xlu1 %1190  ;;  %v646_v39 = vpop.xlane.xlu0 %645 }
 0x62e   :  { %v1496_v55 = vsel %vm1495_vm1, %v1473_v21, %v1399_v27  ;;  %v665_v20 = vsel %vm662_vm9, %v646_v39, %v560_v62 }
 0x62f   :  { %v1505_v23 = vsel %vm1504_vm2, %v1496_v55, 0.0 }
 0x630   :  { %v1507_v47 = vadd.f32 %v1506_v61, %v1505_v23 }
 0x631   :  { %v1482_v28 = vpop.xlane.xlu1 %1481  ;;  %v743_v22 = vpop.xlane.xlu0 %742 }
 0x632   :  { %v762_v1 = vsel %vm759_vm10, %v743_v22, %v665_v20 }
 0x635   :  { %v1188_v40 = vpop.xlane.xlu1 %1187  ;;  %v840_v30 = vpop.xlane.xlu0 %839 }
 0x636   :  { %v859_v52 = vsel %vm856_vm11, %v840_v30, %v762_v1 }
 0x639   :  { %v1285_v15 = vpop.xlane.xlu1 %1284  ;;  %v937_v46 = vpop.xlane.xlu0 %936 }
 0x63a   :  { %v956_v44 = vsel %vm953_vm12, %v937_v46, %v859_v52 }
 0x63d   :  { %v1479_v36 = vpop.xlane.xlu1 %1478  ;;  %v1094_v48 = vpop.xlane.xlu0 %1093 }
 0x63e   :  { %v1111_v31 = vsel %vm1107_vm13, %v1094_v48, %v957_v3 }
 0x63f   :  { %v1208_v49 = vsel %vm1204_vm14, %v1191_v19, %v1111_v31 }
 0x640   :  { %v1305_v16 = vsel %vm1301_vm15, %v1288_v63, %v1208_v49  ;;  %v564_v49 = vsel %vm557_vm8, %v2616_v34, 0.0 }
 0x641   :  { %v1402_v33 = vsel %vm1398_vm0, %v1385_v6, %v1305_v16  ;;  %v1091_v53 = vpop.xlane.xlu1 %1090  ;;  %v1382_v43 = vpop.xlane.xlu0 %1381 }
 0x642   :  { %v1110_v42 = vsel %vm1107_vm13, %v1091_v53, %v956_v44  ;;  %v1499_v38 = vsel %vm1495_vm1, %v1482_v28, %v1402_v33 }
 0x643   :  { %v1207_v32 = vsel %vm1204_vm14, %v1188_v40, %v1110_v42  ;;  %v1510_v45 = vsel %vm1504_vm2, %v1499_v38, 0.0 }
 0x644   :  { %v1304_v41 = vsel %vm1301_vm15, %v1285_v15, %v1207_v32 }
 0x645   :  { %v1401_v21 = vsel %vm1398_vm0, %v1382_v43, %v1304_v41  ;;  %v1197_v25 = vpop.xlane.xlu1 %1196  ;;  %v655_v11 = vpop.xlane.xlu0 %654  ;;  %v565_v43 = vsel %vm557_vm8, %v2556_v35, 0.0 }
 0x646   :  { %v1498_v51 = vsel %vm1495_vm1, %v1479_v36, %v1401_v21 }
 0x647   :  { %v1508_v54 = vsel %vm1504_vm2, %v1498_v51, 0.0 }
 0x648   :  { %v1509_v58 = vadd.f32 %v1508_v54, %v1507_v47  ;;  %v668_v47 = vsel %vm662_vm9, %v655_v11, %v563_v57 }
 0x649   :  { %v2918_v60 = vpop.xlane.xlu1 %1487  ;;  %v752_v18 = vpop.xlane.xlu0 %751 }
 0x64a   :  { %v1511_v17 = vadd.f32 %v1510_v45, %v1509_v58  ;;  %v765_v20 = vsel %vm759_vm10, %v752_v18, %v668_v47 }
 0x64d   :  { %v652_v37 = vpop.xlane.xlu1 %651  ;;  %v849_v56 = vpop.xlane.xlu0 %848 }
 0x64e   :  { %v667_v27 = vsel %vm662_vm9, %v652_v37, %v562_v13  ;;  %v862_v40 = vsel %vm856_vm11, %v849_v56, %v765_v20 }
 0x651   :  { %v749_v0 = vpop.xlane.xlu1 %748  ;;  %v946_v24 = vpop.xlane.xlu0 %945 }
 0x652   :  { %v764_v19 = vsel %vm759_vm10, %v749_v0, %v667_v27  ;;  %v959_v30 = vsel %vm953_vm12, %v946_v24, %v862_v40 }
 0x655   :  { %v846_v59 = vpop.xlane.xlu1 %845  ;;  %v1294_v7 = vpop.xlane.xlu0 %1293 }
 0x656   :  { %v861_v39 = vsel %vm856_vm11, %v846_v59, %v764_v19 }
 0x659   :  { %v1194_v4 = vpop.xlane.xlu1 %1193  ;;  %v1391_v8 = vpop.xlane.xlu0 %1390 }
 0x65d   :  { %v1100_v12 = vpop.xlane.xlu1 %1099  ;;  %v943_v14 = vpop.xlane.xlu0 %942 }
 0x65e   :  { %v958_v55 = vsel %vm953_vm12, %v943_v14, %v861_v39  ;;  %v1113_v9 = vsel %vm1107_vm13, %v1100_v12, %v959_v30 }
 0x65f   :  { %v1210_v44 = vsel %vm1204_vm14, %v1197_v25, %v1113_v9 }
 0x660   :  { %v1307_v16 = vsel %vm1301_vm15, %v1294_v7, %v1210_v44 }
 0x661   :  { %v1485_v5 = vpop.xlane.xlu1 %1484  ;;  %v1291_v3 = vpop.xlane.xlu0 %1290  ;;  %v1404_v38 = vsel %vm1398_vm0, %v1391_v8, %v1307_v16 }
 0x662   :  { %v1501_v58 = vsel %vm1495_vm1, %v2918_v60, %v1404_v38 }
 0x663   :  { %v1514_v7 = vsel %vm1504_vm2, %v1501_v58, 0.0 }
 0x665   :  { %v1097_v50 = vpop.xlane.xlu1 %1096  ;;  %v1388_v63 = vpop.xlane.xlu0 %1387 }
 0x666   :  { %v1112_v62 = vsel %vm1107_vm13, %v1097_v50, %v958_v55  ;;  %v1526_v55 = vld [vmem:[%s3032_s4] sm:$0x1]  ;;  %s1759_s4 = scalar_lea.vmem %s1548_s11, 16 }
 0x667   :  { %v1209_v28 = vsel %vm1204_vm14, %v1194_v4, %v1112_v62  ;;  %p1760_p0 = scmp.ne.s32.totalorder %s1548_s11, %s1759_s4  ;;  %p1765_p2 = scmp.lt.s32.totalorder %s1763_s12, %s1759_s4 }
 0x668   :  { %v1306_v52 = vsel %vm1301_vm15, %v1291_v3, %v1209_v28 }
 0x669   :  { %v658_v2 = vpop.xlane.xlu1 %657  ;;  %v661_v6 = vpop.xlane.xlu0 %660  ;;  %v1403_v36 = vsel %vm1398_vm0, %v1388_v63, %v1306_v52  ;;  %p1766_p3 = por %p1765_p2, %p1764_p1 }
 0x66a   :  { %v1500_v33 = vsel %vm1495_vm1, %v1485_v5, %v1403_v36  ;;  %v669_v53 = vsel %vm662_vm9, %v658_v2, %v564_v49  ;;  %v670_v32 = vsel %vm662_vm9, %v661_v6, %v565_v43 }
 0x66b   :  { %v1512_v34 = vsel %vm1504_vm2, %v1500_v33, 0.0  ;;  %p1767_p4 = pnand %p1766_p3, %p1760_p0 }
 0x66c   :  { %v1513_v18 = vadd.f32 %v1512_v34, %v1511_v17 }
 0x66d   :  { %v755_v10 = vpop.xlane.xlu1 %754  ;;  %v758_v26 = vpop.xlane.xlu0 %757 }
 0x66e   :  { %v766_v42 = vsel %vm759_vm10, %v755_v10, %v669_v53  ;;  %v767_v11 = vsel %vm759_vm10, %v758_v26, %v670_v32  ;;  %v1515_v17 = vadd.f32 %v1514_v7, %v1513_v18 }
 0x671   :  { %v852_v61 = vpop.xlane.xlu1 %851  ;;  %v855_v23 = vpop.xlane.xlu0 %854 }
 0x672   :  { %v863_v41 = vsel %vm856_vm11, %v852_v61, %v766_v42  ;;  %v864_v51 = vsel %vm856_vm11, %v855_v23, %v767_v11 }
 0x675   :  { %v1200_v22 = vpop.xlane.xlu1 %1199  ;;  %v952_v1 = vpop.xlane.xlu0 %951 }
 0x676   :  { %v961_v45 = vsel %vm953_vm12, %v952_v1, %v864_v51 }
 0x679   :  { %v1106_v15 = vpop.xlane.xlu1 %1105  ;;  %v1203_v46 = vpop.xlane.xlu0 %1202 }
 0x67a   :  { %v1115_v56 = vsel %vm1107_vm13, %v1106_v15, %v961_v45 }
 0x67b   :  { %v1212_v4 = vsel %vm1204_vm14, %v1203_v46, %v1115_v56 }
 0x67d   :  { %v1394_v48 = vpop.xlane.xlu1 %1393  ;;  %v1300_v31 = vpop.xlane.xlu0 %1299 }
 0x67e   :  { %v1309_v12 = vsel %vm1301_vm15, %v1300_v31, %v1212_v4 }
 0x681   :  { %v1103_v21 = vpop.xlane.xlu1 %1102  ;;  %v949_v25 = vpop.xlane.xlu0 %948 }
 0x682   :  { %v960_v35 = vsel %vm953_vm12, %v949_v25, %v863_v41 }
 0x683   :  { %v1114_v54 = vsel %vm1107_vm13, %v1103_v21, %v960_v35 }
 0x684   :  { %v1211_v37 = vsel %vm1204_vm14, %v1200_v22, %v1114_v54 }
 0x685   :  { %v1491_v0 = vpop.xlane.xlu1 %1490  ;;  %v1297_v24 = vpop.xlane.xlu0 %1296 }
 0x686   :  { %v1308_v59 = vsel %vm1301_vm15, %v1297_v24, %v1211_v37 }
 0x687   :  { %v1405_v60 = vsel %vm1398_vm0, %v1394_v48, %v1308_v59 }
 0x688   :  { %v1502_v8 = vsel %vm1495_vm1, %v1491_v0, %v1405_v60 }
 0x689   :  { %v1516_v14 = vsel %vm1504_vm2, %v1502_v8, 0.0  ;;  %v1494_v5 = vpop.xlane.xlu1 %1493  ;;  %v1397_v3 = vpop.xlane.xlu0 %1396 }
 0x68a   :  { %v1517_v50 = vadd.f32 %v1516_v14, %v1515_v17  ;;  %v1406_v63 = vsel %vm1398_vm0, %v1397_v3, %v1309_v12 }
 0x68b   :  { %v1503_v2 = vsel %vm1495_vm1, %v1494_v5, %v1406_v63 }
 0x68c   :  { %v1518_v6 = vsel %vm1504_vm2, %v1503_v2, 0.0 }
 0x68d   :  { %v1519_v13 = vadd.f32 %v1518_v6, %v1517_v50 }
 0x68f   :  { %v1520_v10 = vrot.slane %v1519_v13, 4 }
 0x691   :  { %v1521_v26 = vadd.f32 %v1520_v10, %v1519_v13 }
 0x693   :  { %v1522_v27 = vrot.slane %v1521_v26, 2 }
 0x695   :  { %v1523_v19 = vadd.f32 %v1522_v27, %v1521_v26 }
 0x697   :  { %v1524_v39 = vrot.slane %v1523_v19, 1 }
 0x699   :  { %v1525_v61 = vadd.f32 %v1524_v39, %v1523_v19 }
 0x69b   :  { %v1527_v23 = vadd.f32 %v1526_v55, %v1525_v61 }
 0x69d   :  { %v1529_v62 = vsel %vm1528_vm3, %v1527_v23, -inf }
 0x69e   :  { %1530 = vmax.xlane.f32.xlu0 %v1529_v62 }
 0x72b   :  { %v1531_v29 = vpop.xlane.xlu0 %1530 }
 0x72c   :  { %v1532_v57 = vsub.f32 %v1527_v23, %v1531_v29 }
 0x72e   :  { %v1533_v47 = vmul.f32 1.442695, %v1532_v57 }
 0x730   :  { %1755 = vpow2.f32 %v1533_v47 }
 0x73a   :  { %v1756_v20 = vpop.eup %1755 }
 0x73b   :  { %v1535_v28 = vsel %vm1528_vm3, %v1756_v20, 0.0 }
 0x73c   :  { %1536 = vadd.xlane.f32.xlu1 %v1535_v28 }
 0x7c9   :  { %v1537_v22 = vpop.xlane.xlu1 %1536 }
 0x7ca   :  { %1757 = vrcp.f32 %v1537_v22 }
 0x7d4   :  { %v1758_v1 = vpop.eup %1757 }
 0x7d5   :  { %v1539_v40 = vmul.f32 %v1758_v1, %v1756_v20 }
 0x7d7   :  { %1540 = vst.msk [vmem:[#allocation2] sm:$0x1] %vm1528_vm3, %v1539_v40 }
 0x7d8   :  { %1770 = shalt.err (!%p1767_p4)
}
 0x7d9   :  { %s1771_s2 = scalar_lea.hbm %s3033_s5, 16 }
 0x7da   :  { %p1772_p5 = scmp.ne.s32.totalorder %s3033_s5, %s1771_s2  ;;  %p1775_p6 = scmp.lt.u32.totalorder %s1771_s2, %s3033_s5 }
 0x7dc   :  { %p1777_p7 = pnand %p1775_p6, %p1772_p5 }
 0x7de   :  { %1780 = shalt.err (!%p1777_p7)
}
 0x7df   :  { %1550 = dma.vmem_to_hbm [thread:$0]  %s1548_s11, 16, %s3033_s5, [#allocation3]  }
 0x7e0   :  { %1781 = dma.done.wait [#allocation3], 16  }
 0x7e1   :  { %1782 = vsyncadd [#allocation3], 4294967280 }
 0x7e2   :  { %1554 = vsyncpa [#allocation3], 1 }

</bundles_post_ra>
